<compile_context>
chip_gen: v7x
topology: tpu7x:2x2x1
jax: 0.10.0
libtpu: 0.0.40
codegen_flags: <defaults>
</compile_context>

<pallas_src>
import functools

import jax
import jax.numpy as jnp
from jax.experimental import pallas as pl
from jax.experimental.pallas import tpu as pltpu

FC1_DIMS = 1024
FC2_DIMS = 512

A_PAD = 128        # lane-dense output width (real num_actions sliced in wrapper)
SMALL_TILE = 16    # bf16 sublane pack; small-batch latency path
LARGE_TILE = 512   # big-batch tile; capped for v5e's smaller scoped-VMEM default


def _mlp_kernel(x_ref, w1_ref, b1_ref, w2_ref, b2_ref, w3_ref, b3_ref, o_ref):
    # x arrives f32; cast to bf16 in-kernel (rides free VPU slots) for the MXU.
    x = x_ref[...].astype(jnp.bfloat16)
    # fc1 + ReLU (bf16 x bf16 -> f32 accumulate)
    h1 = jnp.dot(x, w1_ref[...], preferred_element_type=jnp.float32)
    h1 = jnp.maximum(h1 + b1_ref[...], 0.0)
    # fc2 + ReLU
    h2 = jnp.dot(h1.astype(jnp.bfloat16), w2_ref[...],
                 preferred_element_type=jnp.float32)
    h2 = jnp.maximum(h2 + b2_ref[...], 0.0)
    # fc3 (no activation), lane-dense bf16 store
    y = jnp.dot(h2.astype(jnp.bfloat16), w3_ref[...],
                preferred_element_type=jnp.float32) + b3_ref[...]
    o_ref[...] = y.astype(o_ref.dtype)


def prepare_params(w1, b1, w2, b2, w3, b3):
    """One-time parameter prep (call OUTSIDE the per-step path):
    cast weights to bf16 and zero-pad fc3 to a lane-dense A_PAD-wide slab."""
    A = w3.shape[1]
    if A < A_PAD:
        w3 = jnp.pad(w3, ((0, 0), (0, A_PAD - A)))
        b3 = jnp.pad(b3, ((0, 0), (0, A_PAD - A)))
    return (w1.astype(jnp.bfloat16), b1.astype(jnp.float32),
            w2.astype(jnp.bfloat16), b2.astype(jnp.float32),
            w3.astype(jnp.bfloat16), b3.astype(jnp.float32))


def _pick_tile(B):
    """Static (trace-time) batch-tile selection."""
    if B <= 32:
        # Latency path: single grid step, pad only to a 16-row sublane pack.
        return max(SMALL_TILE, ((B + 15) // 16) * 16)
    if B >= 2 * LARGE_TILE:
        # Throughput path: 512-row tiles, many parallel grid steps.
        return LARGE_TILE
    # Medium batch: split into (at least) two tiles so both v7x TensorCores
    # get work; round the tile up to a multiple of 16.
    return ((-(-B // 2) + 15) // 16) * 16


@functools.partial(jax.jit, static_argnames=("num_actions",))
def network_forward(x, w1, b1, w2, b2, w3, b3, *, num_actions):
    """Forward pass. Expects params already processed by `prepare_params`.

    x : (B, in_dim) f32
    w1: (in_dim, 1024) bf16, b1: (1, 1024) f32
    w2: (1024, 512)   bf16, b2: (1, 512)  f32
    w3: (512, A_PAD)  bf16, b3: (1, A_PAD) f32
    returns (B, num_actions) f32
    """
    B, in_dim = x.shape

    tile_b = _pick_tile(B)
    n_tiles = pl.cdiv(B, tile_b)
    B_pad = n_tiles * tile_b
    if B_pad != B:
        x = jnp.pad(x, ((0, B_pad - B), (0, 0)))

    # Constant block index -> weights/biases stay resident in VMEM across the
    # batch grid instead of being re-DMA'd per tile.
    resident = lambda shape: pl.BlockSpec(shape, lambda i: (0, 0))

    out_pad = pl.pallas_call(
        _mlp_kernel,
        out_shape=jax.ShapeDtypeStruct((B_pad, A_PAD), jnp.bfloat16),
        grid=(n_tiles,),
        in_specs=[
            pl.BlockSpec((tile_b, in_dim), lambda i: (i, 0)),   # x tiled on batch
            resident((in_dim, FC1_DIMS)), resident((1, FC1_DIMS)),
            resident((FC1_DIMS, FC2_DIMS)), resident((1, FC2_DIMS)),
            resident((FC2_DIMS, A_PAD)), resident((1, A_PAD)),
        ],
        out_specs=pl.BlockSpec((tile_b, A_PAD), lambda i: (i, 0)),
        compiler_params=pltpu.CompilerParams(
            dimension_semantics=("parallel",)),
    )(x, w1, b1, w2, b2, w3, b3)

    return out_pad[:B, :num_actions].astype(jnp.float32)


def init_params(key, in_dim, num_actions):
    """Deterministic PyTorch-Linear-style init: U(-1/sqrt(fan_in), 1/sqrt(fan_in))."""
    def linear(k, fan_in, fan_out):
        kw, kb = jax.random.split(k)
        bound = 1.0 / jnp.sqrt(jnp.float32(fan_in))
        w = jax.random.uniform(kw, (fan_in, fan_out), jnp.float32, -bound, bound)
        b = jax.random.uniform(kb, (1, fan_out), jnp.float32, -bound, bound)
        return w, b

    k1, k2, k3 = jax.random.split(key, 3)
    w1, b1 = linear(k1, in_dim, FC1_DIMS)
    w2, b2 = linear(k2, FC1_DIMS, FC2_DIMS)
    w3, b3 = linear(k3, FC2_DIMS, num_actions)
    return w1, b1, w2, b2, w3, b3


if __name__ == "__main__":
    # TODO(synk): the PyTorch module also owns an Adam optimizer / training
    # step; only the forward pass is implemented here.
    key = jax.random.PRNGKey(0)
    kx, kp = jax.random.split(key)

    batch = 8
    in_dim = 32          # inputShape = (32,)
    num_actions = 4

    x = jax.random.normal(kx, (batch, in_dim), jnp.float32)
    raw_params = init_params(kp, in_dim, num_actions)
    params = prepare_params(*raw_params)   # one-time bf16 cast + fc3 padding

    out = network_forward(x, *params, num_actions=num_actions)
    out = jax.block_until_ready(out)

    # Reference in plain JAX mirroring the kernel's bf16 weight/activation
    # rounding, f32 accumulation, and bf16 output store.
    w1, b1, w2, b2, w3, b3 = raw_params
    f32 = lambda a: a.astype(jnp.bfloat16).astype(jnp.float32)
    ref = jnp.maximum(f32(x) @ f32(w1) + b1, 0.0)
    ref = jnp.maximum(f32(ref) @ f32(w2) + b2, 0.0)
    ref = f32(ref) @ f32(w3) + b3
    ref = ref.astype(jnp.bfloat16).astype(jnp.float32)

    assert out.shape == (batch, num_actions)
    assert jnp.allclose(out, ref, atol=2e-2, rtol=2e-2)

    print("KERNEL_OK")
</pallas_src>

<mosaic_0001>
module attributes {stable_mosaic.version = 11 : i64} {
  func.func @_mlp_kernel(%arg0: i32, %arg1: memref<16x32xf32, #tpu.memory_space<vmem>>, %arg2: memref<32x1024xbf16, #tpu.memory_space<vmem>>, %arg3: memref<1x1024xf32, #tpu.memory_space<vmem>>, %arg4: memref<1024x512xbf16, #tpu.memory_space<vmem>>, %arg5: memref<1x512xf32, #tpu.memory_space<vmem>>, %arg6: memref<512x128xbf16, #tpu.memory_space<vmem>>, %arg7: memref<1x128xf32, #tpu.memory_space<vmem>>, %arg8: memref<16x128xbf16, #tpu.memory_space<vmem>>) attributes {dimension_semantics = [#tpu.dimension_semantics<parallel>], iteration_bounds = array<i64: 1>, scalar_prefetch = 0 : i64, scratch_operands = 0 : i64, tpu.core_type = #tpu.core_type<tc>, window_params = [{transform_indices = @transform_0, window_bounds = array<i64: 16, 32>}, {pipeline_mode = #tpu.pipeline_mode<synchronous>, transform_indices = @transform_1, window_bounds = array<i64: 32, 1024>}, {pipeline_mode = #tpu.pipeline_mode<synchronous>, transform_indices = @transform_2, window_bounds = array<i64: 1, 1024>}, {pipeline_mode = #tpu.pipeline_mode<synchronous>, transform_indices = @transform_3, window_bounds = array<i64: 1024, 512>}, {pipeline_mode = #tpu.pipeline_mode<synchronous>, transform_indices = @transform_4, window_bounds = array<i64: 1, 512>}, {pipeline_mode = #tpu.pipeline_mode<synchronous>, transform_indices = @transform_5, window_bounds = array<i64: 512, 128>}, {pipeline_mode = #tpu.pipeline_mode<synchronous>, transform_indices = @transform_6, window_bounds = array<i64: 1, 128>}, {transform_indices = @transform_7, window_bounds = array<i64: 16, 128>}]} {
    %c0 = arith.constant 0 : index
    %c0_0 = arith.constant 0 : index
    %0 = vector.load %arg1[%c0, %c0_0] : memref<16x32xf32, #tpu.memory_space<vmem>>, vector<16x32xf32>
    %1 = arith.truncf %0 : vector<16x32xf32> to vector<16x32xbf16>
    %c0_1 = arith.constant 0 : index
    %c0_2 = arith.constant 0 : index
    %2 = vector.load %arg2[%c0_1, %c0_2] : memref<32x1024xbf16, #tpu.memory_space<vmem>>, vector<32x1024xbf16>
    %cst = arith.constant dense<0.000000e+00> : vector<16x1024xf32>
    %3 = tpu.matmul %1, %2, %cst {dimension_numbers = #tpu.dot_dimension_numbers<[1], [0], [0], [1], [0, 0, 1, 1], [], []>} : vector<16x32xbf16>, vector<32x1024xbf16>, vector<16x1024xf32> -> vector<16x1024xf32>
    %c0_3 = arith.constant 0 : index
    %c0_4 = arith.constant 0 : index
    %4 = vector.load %arg3[%c0_3, %c0_4] : memref<1x1024xf32, #tpu.memory_space<vmem>>, vector<1x1024xf32>
    %5 = vector.broadcast %4 : vector<1x1024xf32> to vector<16x1024xf32>
    %6 = arith.addf %3, %5 : vector<16x1024xf32>
    %cst_5 = arith.constant 0.000000e+00 : f32
    %7 = vector.broadcast %cst_5 : f32 to vector<16x1024xf32>
    %8 = arith.maximumf %6, %7 : vector<16x1024xf32>
    %9 = arith.truncf %8 : vector<16x1024xf32> to vector<16x1024xbf16>
    %c0_6 = arith.constant 0 : index
    %c0_7 = arith.constant 0 : index
    %10 = vector.load %arg4[%c0_6, %c0_7] : memref<1024x512xbf16, #tpu.memory_space<vmem>>, vector<1024x512xbf16>
    %cst_8 = arith.constant dense<0.000000e+00> : vector<16x512xf32>
    %11 = tpu.matmul %9, %10, %cst_8 {dimension_numbers = #tpu.dot_dimension_numbers<[1], [0], [0], [1], [0, 0, 1, 1], [], []>} : vector<16x1024xbf16>, vector<1024x512xbf16>, vector<16x512xf32> -> vector<16x512xf32>
    %c0_9 = arith.constant 0 : index
    %c0_10 = arith.constant 0 : index
    %12 = vector.load %arg5[%c0_9, %c0_10] : memref<1x512xf32, #tpu.memory_space<vmem>>, vector<1x512xf32>
    %13 = vector.broadcast %12 : vector<1x512xf32> to vector<16x512xf32>
    %14 = arith.addf %11, %13 : vector<16x512xf32>
    %cst_11 = arith.constant 0.000000e+00 : f32
    %15 = vector.broadcast %cst_11 : f32 to vector<16x512xf32>
    %16 = arith.maximumf %14, %15 : vector<16x512xf32>
    %17 = arith.truncf %16 : vector<16x512xf32> to vector<16x512xbf16>
    %c0_12 = arith.constant 0 : index
    %c0_13 = arith.constant 0 : index
    %18 = vector.load %arg6[%c0_12, %c0_13] : memref<512x128xbf16, #tpu.memory_space<vmem>>, vector<512x128xbf16>
    %cst_14 = arith.constant dense<0.000000e+00> : vector<16x128xf32>
    %19 = tpu.matmul %17, %18, %cst_14 {dimension_numbers = #tpu.dot_dimension_numbers<[1], [0], [0], [1], [0, 0, 1, 1], [], []>} : vector<16x512xbf16>, vector<512x128xbf16>, vector<16x128xf32> -> vector<16x128xf32>
    %c0_15 = arith.constant 0 : index
    %c0_16 = arith.constant 0 : index
    %20 = vector.load %arg7[%c0_15, %c0_16] : memref<1x128xf32, #tpu.memory_space<vmem>>, vector<1x128xf32>
    %21 = vector.broadcast %20 : vector<1x128xf32> to vector<16x128xf32>
    %22 = arith.addf %19, %21 : vector<16x128xf32>
    %23 = arith.truncf %22 : vector<16x128xf32> to vector<16x128xbf16>
    %c0_17 = arith.constant 0 : index
    %c0_18 = arith.constant 0 : index
    %24 = vector.load %arg8[%c0_17, %c0_18] : memref<16x128xbf16, #tpu.memory_space<vmem>>, vector<16x128xbf16>
    tpu.vector_store %arg8[%c0_17, %c0_18], %23 {strides = array<i32>} : memref<16x128xbf16, #tpu.memory_space<vmem>>, vector<16x128xbf16>,
    return
  }
  func.func @transform_0(%arg0: i32) -> (i32, i32) {
    %c0_i32 = arith.constant 0 : i32
    %c0_i32_0 = arith.constant 0 : i32
    return %arg0, %c0_i32 : i32, i32
  }
  func.func @transform_1(%arg0: i32) -> (i32, i32) {
    %c0_i32 = arith.constant 0 : i32
    %c0_i32_0 = arith.constant 0 : i32
    %c0_i32_1 = arith.constant 0 : i32
    return %c0_i32, %c0_i32_0 : i32, i32
  }
  func.func @transform_2(%arg0: i32) -> (i32, i32) {
    %c0_i32 = arith.constant 0 : i32
    %c0_i32_0 = arith.constant 0 : i32
    %c0_i32_1 = arith.constant 0 : i32
    return %c0_i32, %c0_i32_0 : i32, i32
  }
  func.func @transform_3(%arg0: i32) -> (i32, i32) {
    %c0_i32 = arith.constant 0 : i32
    %c0_i32_0 = arith.constant 0 : i32
    %c0_i32_1 = arith.constant 0 : i32
    return %c0_i32, %c0_i32_0 : i32, i32
  }
  func.func @transform_4(%arg0: i32) -> (i32, i32) {
    %c0_i32 = arith.constant 0 : i32
    %c0_i32_0 = arith.constant 0 : i32
    %c0_i32_1 = arith.constant 0 : i32
    return %c0_i32, %c0_i32_0 : i32, i32
  }
  func.func @transform_5(%arg0: i32) -> (i32, i32) {
    %c0_i32 = arith.constant 0 : i32
    %c0_i32_0 = arith.constant 0 : i32
    %c0_i32_1 = arith.constant 0 : i32
    return %c0_i32, %c0_i32_0 : i32, i32
  }
  func.func @transform_6(%arg0: i32) -> (i32, i32) {
    %c0_i32 = arith.constant 0 : i32
    %c0_i32_0 = arith.constant 0 : i32
    %c0_i32_1 = arith.constant 0 : i32
    return %c0_i32, %c0_i32_0 : i32, i32
  }
  func.func @transform_7(%arg0: i32) -> (i32, i32) {
    %c0_i32 = arith.constant 0 : i32
    %c0_i32_0 = arith.constant 0 : i32
    return %arg0, %c0_i32 : i32, i32
  }
}

</mosaic_0001>

<bundles_post_ra>
// kernel: network_forward.1
= control target key start
LH: loop header
LB: loop body
LE: loop exit
PB: predicated region body
PF: predicated region fallthrough
CT: control target
= control target key end

     0   :  { %12 = vsyncpa [#allocation3], 0  ;;  %s3738_s0 = inlined_call_operand.vmem [shape: f32[16,32], index: 0, kind: input, shape index: {}]   ;;  %s3739_s1 = inlined_call_operand.hbm [shape: bf16[32,1024], index: 1, kind: input, shape index: {}]   ;;  %s3740_s2 = inlined_call_operand.vmem [shape: f32[1,1024], index: 2, kind: input, shape index: {}]   ;;  %s3741_s3 = inlined_call_operand.hbm [shape: bf16[1024,512], index: 3, kind: input, shape index: {}]   ;;  %s3742_s4 = inlined_call_operand.vmem [shape: f32[1,512], index: 4, kind: input, shape index: {}]   ;;  %s3743_s5 = inlined_call_operand.hbm [shape: bf16[512,128], index: 5, kind: input, shape index: {}]   ;;  %s3744_s6 = inlined_call_operand.vmem [shape: f32[1,128], index: 6, kind: input, shape index: {}]   ;;  %s3745_s7 = inlined_call_operand.vmem [shape: bf16[16,128], index: 7, kind: output, shape index: {}]  }
   0x1   :  { %13 = vsyncpa [#allocation5], 0  ;;  %s3574_s24 = smov [#allocation4]   ;;  %s3504_s28 = scalar_lea.hbm %s3741_s3, 32768 }
   0x2   :  { %s35_s25 = sshll.u32 %s3574_s24, 4  ;;  %p3505_p0 = scmp.ne.s32.totalorder %s3741_s3, %s3504_s28  ;;  %s36_s25 = int_to_ptr.vmem [resolvable:$true] %s35_s25 }
   0x3   :  { %p3508_p1 = scmp.lt.u32.totalorder %s3504_s28, %s3741_s3 }
   0x5   :  { %p3510_p2 = pnand %p3508_p1, %p3505_p0 }
   0x7   :  { %3513 = shalt.err (!%p3510_p2)
}
   0x8   :  { %s3514_s10 = scalar_lea.vmem %s36_s25, 32768  ;;  %p3519_p4 = scmp.lt.s32.totalorder %s36_s25, %s36_s25 }
   0x9   :  { %p3515_p3 = scmp.ne.s32.totalorder %s36_s25, %s3514_s10  ;;  %p3520_p5 = scmp.lt.s32.totalorder %s3514_s10, %s3514_s10 }
   0xb   :  { %p3521_p6 = por %p3520_p5, %p3519_p4 }
   0xd   :  { %p3522_p7 = pnand %p3521_p6, %p3515_p3 }
   0xf   :  { %3525 = shalt.err (!%p3522_p7)
}
  0x10   :  { %s3575_s11 = smov 256   ;;  %s3576_s12 = smov 16  }
  0x11   :  { %41 = dma.hbm_to_vmem [thread:$0]  %s3741_s3, 32768, %s36_s25, [#allocation5], %s3575_s11, %s3575_s11, %s3576_s12  }
  0x12   :  { %s3577_s15 = smov [#allocation2]   ;;  %s3526_s19 = scalar_lea.hbm %s3739_s1, 2048 }
  0x13   :  { %s21_s16 = sshll.u32 %s3577_s15, 4  ;;  %p3527_p8 = scmp.ne.s32.totalorder %s3739_s1, %s3526_s19  ;;  %s22_s16 = int_to_ptr.vmem [resolvable:$true] %s21_s16 }
  0x14   :  { %p3530_p9 = scmp.lt.u32.totalorder %s3526_s19, %s3739_s1 }
  0x16   :  { %p3532_p10 = pnand %p3530_p9, %p3527_p8 }
  0x18   :  { %3535 = shalt.err (!%p3532_p10)
}
  0x19   :  { %s3536_s24 = scalar_lea.vmem %s22_s16, 2048  ;;  %p3541_p12 = scmp.lt.s32.totalorder %s22_s16, %s22_s16 }
  0x1a   :  { %p3537_p11 = scmp.ne.s32.totalorder %s22_s16, %s3536_s24  ;;  %p3542_p13 = scmp.lt.s32.totalorder %s3536_s24, %s3536_s24 }
  0x1c   :  { %p3543_p0 = por %p3542_p13, %p3541_p12 }
  0x1e   :  { %p3544_p1 = pnand %p3543_p0, %p3537_p11 }
  0x20   :  { %3547 = shalt.err (!%p3544_p1)
}
  0x21   :  { %s3578_s3 = smov 512   ;;  %s3579_s25 = smov 32  }
  0x22   :  { %27 = dma.hbm_to_vmem [thread:$0]  %s3739_s1, 2048, %s22_s16, [#allocation3], %s3578_s3, %s3578_s3, %s3579_s25  }
  0x23   :  { %s3580_s28 = smov [#allocation6]   ;;  %s3548_s9 = scalar_lea.hbm %s3743_s5, 4096 }
  0x24   :  { %s49_s29 = sshll.u32 %s3580_s28, 4  ;;  %p3549_p2 = scmp.ne.s32.totalorder %s3743_s5, %s3548_s9  ;;  %s50_s29 = int_to_ptr.vmem [resolvable:$true] %s49_s29 }
  0x25   :  { %p3552_p3 = scmp.lt.u32.totalorder %s3548_s9, %s3743_s5 }
  0x27   :  { %p3554_p4 = pnand %p3552_p3, %p3549_p2 }
  0x29   :  { %3557 = shalt.err (!%p3554_p4)
}
  0x2a   :  { %s3558_s14 = scalar_lea.vmem %s50_s29, 4096  ;;  %p3563_p6 = scmp.lt.s32.totalorder %s50_s29, %s50_s29 }
  0x2b   :  { %p3559_p5 = scmp.ne.s32.totalorder %s50_s29, %s3558_s14  ;;  %p3564_p7 = scmp.lt.s32.totalorder %s3558_s14, %s3558_s14 }
  0x2d   :  { %p3565_p8 = por %p3564_p7, %p3563_p6 }
  0x2f   :  { %p3566_p9 = pnand %p3565_p8, %p3559_p5 }
  0x31   :  { %3569 = shalt.err (!%p3566_p9)
}
  0x32   :  { %s3581_s1 = smov 64   ;;  %s3582_s15 = smov 4  }
  0x33   :  { %55 = dma.hbm_to_vmem [thread:$0]  %s3743_s5, 4096, %s50_s29, [#allocation5], %s3581_s1, %s3581_s1, %s3582_s15  }
  0x34   :  { %3570 = dma.done.wait [#allocation3], 2048  }
  0x35   :  { %3571 = vsyncadd [#allocation3], 4294965248 }
  0x36   :  { %3572 = dma.done.wait [#allocation5], 36864  }
  0x37   :  { %3573 = vsyncadd [#allocation5], 4294930432  ;;  %v3583_v0 = vmov 0   ;;  %v71_v1 = vld [vmem:[#allocation2] sm:$0xff]  ;;  %v72_v8 = vld [vmem:[#allocation2 + $0x8] sm:$0xff]  ;;  %vm209_vm0 = vcmask 261120  }
  0x38   :  { %245 = vmatprep.mubr.bf16.mxu0 %v3583_v0  ;;  %288 = vmatprep.mubr.bf16.mxu1 %v3583_v0  ;;  %v75_v2 = vld [vmem:[#allocation2 + $0x20] sm:$0xff]  ;;  %v76_v9 = vld [vmem:[#allocation2 + $0x28] sm:$0xff]  ;;  %v73_v14 = vld [vmem:[#allocation2 + $0x10] sm:$0xff] }
  0x39   :  { %v79_v3 = vld [vmem:[#allocation2 + $0x40] sm:$0xff]  ;;  %v2685_v4 = vcombine.high %v71_v1, %v75_v2  ;;  %v2684_v5 = vcombine.low %v71_v1, %v75_v2  ;;  %v80_v10 = vld [vmem:[#allocation2 + $0x48] sm:$0xff]  ;;  %v2687_v11 = vcombine.high %v72_v8, %v76_v9  ;;  %v2686_v12 = vcombine.low %v72_v8, %v76_v9  ;;  %v77_v15 = vld [vmem:[#allocation2 + $0x30] sm:$0xff] }
  0x3a   :  { %v83_v6 = vld [vmem:[#allocation2 + $0x60] sm:$0xff]  ;;  %v84_v13 = vld [vmem:[#allocation2 + $0x68] sm:$0xff]  ;;  %v74_v20 = vld [vmem:[#allocation2 + $0x18] sm:$0xff]  ;;  %v2689_v21 = vcombine.high %v73_v14, %v77_v15  ;;  %v2688_v28 = vcombine.low %v73_v14, %v77_v15 }
  0x3b   :  { %v2693_v7 = vcombine.high %v79_v3, %v83_v6  ;;  %213 = vmatprep.subr.bf16.mxu0 %v2685_v4  ;;  %v2692_v16 = vcombine.low %v79_v3, %v83_v6  ;;  %v68_v17 = vld [vmem:[%s3738_s0] sm:$0xff]  ;;  %v69_v18 = vld [vmem:[%s3738_s0 + $0x8] sm:$0xff]  ;;  %v2695_v19 = vcombine.high %v80_v10, %v84_v13  ;;  %256 = vmatprep.subr.bf16.mxu1 %v2687_v11  ;;  %v81_v22 = vld [vmem:[#allocation2 + $0x50] sm:$0xff] }
  0x3c   :  { %214 = vmatpush1.bf16.msra.mxu0 %v2684_v5  ;;  %v78_v23 = vld [vmem:[#allocation2 + $0x38] sm:$0xff]  ;;  %257 = vmatpush1.bf16.msra.mxu1 %v2686_v12  ;;  %v2694_v24 = vcombine.low %v80_v10, %v84_v13  ;;  %v85_v25 = vld [vmem:[#allocation2 + $0x70] sm:$0xff]  ;;  %v70_v26 = vpack.c.bf16 %v69_v18, %v68_v17 }
  0x3d   :  { %215 = vmatprep.subr.bf16.mxu0 %v2693_v7  ;;  %258 = vmatprep.subr.bf16.mxu1 %v2695_v19  ;;  %v2691_v27 = vcombine.high %v74_v20, %v78_v23  ;;  %v82_v29 = vld [vmem:[#allocation2 + $0x58] sm:$0xff]  ;;  %v2697_v31 = vcombine.high %v81_v22, %v85_v25  ;;  %v2690_v32 = vcombine.low %v74_v20, %v78_v23  ;;  %v3090_v35 = vld [vmem:[#allocation4 + $0x4] ss:$16 sps:$4 sm:$0xff]   ;;  %v3088_v38 = vld [vmem:[#allocation4] ss:$16 sps:$4 sm:$0xff]  }
  0x3e   :  { %v86_v30 = vld [vmem:[#allocation2 + $0x78] sm:$0xff]  ;;  %v2696_v34 = vcombine.low %v81_v22, %v85_v25  ;;  %v3096_v39 = vld [vmem:[#allocation4 + $0x24] ss:$16 sps:$4 sm:$0xff]   ;;  %v3094_v42 = vld [vmem:[#allocation4 + $0x20] ss:$16 sps:$4 sm:$0xff]  }
  0x3f   :  { %v2699_v33 = vcombine.high %v82_v29, %v86_v30  ;;  %v2698_v36 = vcombine.low %v82_v29, %v86_v30  ;;  %v3093_v37 = vld [vmem:[#allocation4 + $0xc] ss:$16 sps:$4 sm:$0xff]   ;;  %v3091_v40 = vld [vmem:[#allocation4 + $0x8] ss:$16 sps:$4 sm:$0xff]   ;;  %v3102_v43 = vld [vmem:[#allocation4 + $0x44] ss:$16 sps:$4 sm:$0xff]  }
  0x40   :  { %216 = vmatpush1.bf16.msra.mxu0 %v2692_v16  ;;  %259 = vmatpush1.bf16.msra.mxu1 %v2694_v24  ;;  %v3099_v41 = vld [vmem:[#allocation4 + $0x2c] ss:$16 sps:$4 sm:$0xff]   ;;  %v3097_v44 = vld [vmem:[#allocation4 + $0x28] ss:$16 sps:$4 sm:$0xff]   ;;  %v3100_v46 = vld [vmem:[#allocation4 + $0x40] ss:$16 sps:$4 sm:$0xff]  }
  0x41   :  { %299 = vmatprep.subr.bf16.mxu0 %v2689_v21  ;;  %342 = vmatprep.subr.bf16.mxu1 %v2691_v27  ;;  %v3105_v45 = vld [vmem:[#allocation4 + $0x4c] ss:$16 sps:$4 sm:$0xff]   ;;  %v3108_v47 = vld [vmem:[#allocation4 + $0x64] ss:$16 sps:$4 sm:$0xff]   ;;  %v3103_v48 = vld [vmem:[#allocation4 + $0x48] ss:$16 sps:$4 sm:$0xff]  }
  0x42   :  { %v3111_v49 = vld [vmem:[#allocation4 + $0x6c] ss:$16 sps:$4 sm:$0xff]   ;;  %v3106_v50 = vld [vmem:[#allocation4 + $0x60] ss:$16 sps:$4 sm:$0xff]   ;;  %v3114_v51 = vld [vmem:[#allocation4 + $0x84] ss:$16 sps:$4 sm:$0xff]  }
  0x43   :  { %2700 = vmatmul.mubr.msk.bf16.vlgmr.msra.gmra.mrb[0].mxu0 %vm209_vm0, %v70_v26  ;;  %2701 = vmatmul.mubr.msk.bf16.vlgmr.msra.gmra.mrb[0].mxu1 %vm209_vm0, %v70_v26  ;;  %v3109_v52 = vld [vmem:[#allocation4 + $0x68] ss:$16 sps:$4 sm:$0xff]   ;;  %v3117_v53 = vld [vmem:[#allocation4 + $0x8c] ss:$16 sps:$4 sm:$0xff]   ;;  %v3112_v54 = vld [vmem:[#allocation4 + $0x80] ss:$16 sps:$4 sm:$0xff]  }
  0x44   :  { %300 = vmatpush1.bf16.msra.mxu0 %v2688_v28  ;;  %331 = vmatprep.mubr.bf16.mxu0 %v3583_v0  ;;  %v3120_v55 = vld [vmem:[#allocation4 + $0xa4] ss:$16 sps:$4 sm:$0xff]   ;;  %v3115_v56 = vld [vmem:[#allocation4 + $0x88] ss:$16 sps:$4 sm:$0xff]   ;;  %v3123_v57 = vld [vmem:[#allocation4 + $0xac] ss:$16 sps:$4 sm:$0xff]  }
  0x45   :  { %301 = vmatprep.subr.bf16.mxu0 %v2697_v31  ;;  %343 = vmatpush1.bf16.msra.mxu1 %v2690_v32  ;;  %v3118_v58 = vld [vmem:[#allocation4 + $0xa0] ss:$16 sps:$4 sm:$0xff]   ;;  %v3126_v59 = vld [vmem:[#allocation4 + $0xc4] ss:$16 sps:$4 sm:$0xff]   ;;  %v3121_v60 = vld [vmem:[#allocation4 + $0xa8] ss:$16 sps:$4 sm:$0xff]  }
  0x46   :  { %374 = vmatprep.mubr.bf16.mxu1 %v3583_v0  ;;  %344 = vmatprep.subr.bf16.mxu1 %v2699_v33  ;;  %v3129_v61 = vld [vmem:[#allocation4 + $0xcc] ss:$16 sps:$4 sm:$0xff]   ;;  %v3124_v62 = vld [vmem:[#allocation4 + $0xc0] ss:$16 sps:$4 sm:$0xff]   ;;  %v3127_v63 = vld [vmem:[#allocation4 + $0xc8] ss:$16 sps:$4 sm:$0xff]  }
  0x47   :  { %v3132_v0 = vld [vmem:[#allocation4 + $0xe4] ss:$16 sps:$4 sm:$0xff]   ;;  %v3130_v1 = vld [vmem:[#allocation4 + $0xe0] ss:$16 sps:$4 sm:$0xff]   ;;  %v3135_v2 = vld [vmem:[#allocation4 + $0xec] ss:$16 sps:$4 sm:$0xff]  }
  0x48   :  { %302 = vmatpush1.bf16.msra.mxu0 %v2696_v34  ;;  %v3138_v3 = vld [vmem:[#allocation4 + $0x104] ss:$16 sps:$4 sm:$0xff]   ;;  %v3133_v4 = vld [vmem:[#allocation4 + $0xe8] ss:$16 sps:$4 sm:$0xff]   ;;  %v3141_v5 = vld [vmem:[#allocation4 + $0x10c] ss:$16 sps:$4 sm:$0xff]  }
  0x49   :  { %1967 = vmatprep.subr.bf16.mxu0 %v3090_v35  ;;  %345 = vmatpush1.bf16.msra.mxu1 %v2698_v36  ;;  %v3136_v6 = vld [vmem:[#allocation4 + $0x100] ss:$16 sps:$4 sm:$0xff]   ;;  %v3144_v7 = vld [vmem:[#allocation4 + $0x124] ss:$16 sps:$4 sm:$0xff]   ;;  %v3139_v8 = vld [vmem:[#allocation4 + $0x108] ss:$16 sps:$4 sm:$0xff]  }
  0x4a   :  { %2139 = vmatprep.subr.bf16.mxu1 %v3093_v37  ;;  %v3147_v9 = vld [vmem:[#allocation4 + $0x12c] ss:$16 sps:$4 sm:$0xff]   ;;  %v3142_v10 = vld [vmem:[#allocation4 + $0x120] ss:$16 sps:$4 sm:$0xff]   ;;  %v3150_v11 = vld [vmem:[#allocation4 + $0x144] ss:$16 sps:$4 sm:$0xff]  }
  0x4b   :  { %2702 = vmatmul.mubr.msk.bf16.vlgmr.msra.gmra.mrb[4].mxu0 %vm209_vm0, %v70_v26  ;;  %v3145_v12 = vld [vmem:[#allocation4 + $0x128] ss:$16 sps:$4 sm:$0xff]   ;;  %v3153_v13 = vld [vmem:[#allocation4 + $0x14c] ss:$16 sps:$4 sm:$0xff]   ;;  %v3148_v14 = vld [vmem:[#allocation4 + $0x140] ss:$16 sps:$4 sm:$0xff]  }
  0x4c   :  { %1968 = vmatpush1.bf16.msra.mxu0 %v3088_v38  ;;  %2703 = vmatmul.mubr.msk.bf16.vlgmr.msra.gmra.mrb[4].mxu1 %vm209_vm0, %v70_v26  ;;  %v3156_v15 = vld [vmem:[#allocation4 + $0x164] ss:$16 sps:$4 sm:$0xff]   ;;  %v3151_v16 = vld [vmem:[#allocation4 + $0x148] ss:$16 sps:$4 sm:$0xff]   ;;  %v3159_v17 = vld [vmem:[#allocation4 + $0x16c] ss:$16 sps:$4 sm:$0xff]   ;;  %v89_v38 = vlaneseq }
  0x4d   :  { %1969 = vmatprep.subr.bf16.mxu0 %v3096_v39  ;;  %2140 = vmatpush1.bf16.msra.mxu1 %v3091_v40  ;;  %v3154_v18 = vld [vmem:[#allocation4 + $0x160] ss:$16 sps:$4 sm:$0xff]   ;;  %v3162_v19 = vld [vmem:[#allocation4 + $0x184] ss:$16 sps:$4 sm:$0xff]   ;;  %v3157_v20 = vld [vmem:[#allocation4 + $0x168] ss:$16 sps:$4 sm:$0xff]  }
  0x4e   :  { %2141 = vmatprep.subr.bf16.mxu1 %v3099_v41  ;;  %v3165_v21 = vld [vmem:[#allocation4 + $0x18c] ss:$16 sps:$4 sm:$0xff]   ;;  %v3160_v22 = vld [vmem:[#allocation4 + $0x180] ss:$16 sps:$4 sm:$0xff]   ;;  %v3168_v23 = vld [vmem:[#allocation4 + $0x1a4] ss:$16 sps:$4 sm:$0xff]  }
  0x4f   :  { %v3163_v24 = vld [vmem:[#allocation4 + $0x188] ss:$16 sps:$4 sm:$0xff]   ;;  %v3171_v25 = vld [vmem:[#allocation4 + $0x1ac] ss:$16 sps:$4 sm:$0xff]   ;;  %v3166_v26 = vld [vmem:[#allocation4 + $0x1a0] ss:$16 sps:$4 sm:$0xff]  }
  0x50   :  { %1970 = vmatpush1.bf16.msra.mxu0 %v3094_v42  ;;  %v3169_v27 = vld [vmem:[#allocation4 + $0x1a8] ss:$16 sps:$4 sm:$0xff]   ;;  %v3174_v28 = vld [vmem:[#allocation4 + $0x1c4] ss:$16 sps:$4 sm:$0xff]   ;;  %v3177_v29 = vld [vmem:[#allocation4 + $0x1cc] ss:$16 sps:$4 sm:$0xff]  }
  0x51   :  { %1971 = vmatprep.subr.bf16.mxu0 %v3102_v43  ;;  %2142 = vmatpush1.bf16.msra.mxu1 %v3097_v44  ;;  %v3172_v30 = vld [vmem:[#allocation4 + $0x1c0] ss:$16 sps:$4 sm:$0xff]   ;;  %v3175_v31 = vld [vmem:[#allocation4 + $0x1c8] ss:$16 sps:$4 sm:$0xff]   ;;  %v3180_v32 = vld [vmem:[#allocation4 + $0x1e4] ss:$16 sps:$4 sm:$0xff]  }
  0x52   :  { %2143 = vmatprep.subr.bf16.mxu1 %v3105_v45  ;;  %v3183_v33 = vld [vmem:[#allocation4 + $0x1ec] ss:$16 sps:$4 sm:$0xff]   ;;  %v3178_v34 = vld [vmem:[#allocation4 + $0x1e0] ss:$16 sps:$4 sm:$0xff]   ;;  %v3181_v35 = vld [vmem:[#allocation4 + $0x1e8] ss:$16 sps:$4 sm:$0xff]  }
  0x53   :  { %v3186_v36 = vld [vmem:[#allocation4 + $0x204] ss:$16 sps:$4 sm:$0xff]   ;;  %v3189_v37 = vld [vmem:[#allocation4 + $0x20c] ss:$16 sps:$4 sm:$0xff]   ;;  %v3670_v39 = vshrl.u32 %v89_v38, 7 }
  0x54   :  { %1972 = vmatpush1.bf16.msra.mxu0 %v3100_v46  ;;  %v3676_v41 = vld [vmem:[%s3740_s2] sm:$0xff] }
  0x55   :  { %1973 = vmatprep.subr.bf16.mxu0 %v3108_v47  ;;  %2144 = vmatpush1.bf16.msra.mxu1 %v3103_v48  ;;  %v91_v40 = vsub.s32 0, %v3670_v39  ;;  %v95_v42 = vsub.s32 1, %v3670_v39  ;;  %v99_v43 = vsub.s32 2, %v3670_v39  ;;  %v103_v44 = vsub.s32 3, %v3670_v39  ;;  %v3196_v38 = vld [vmem:[#allocation4 + $0x240] ss:$16 sps:$4 sm:$0xff]  }
  0x56   :  { %2145 = vmatprep.subr.bf16.mxu1 %v3111_v49 }
  0x57   :  { %v92_v45 = vrot.slane %v3676_v41, %v91_v40  ;;  %v96_v46 = vrot.slane %v3676_v41, %v95_v42  ;;  %v100_v47 = vrot.slane %v3676_v41, %v99_v43  ;;  %v104_v49 = vrot.slane %v3676_v41, %v103_v44 }
  0x58   :  { %1974 = vmatpush1.bf16.msra.mxu0 %v3106_v50  ;;  %v107_v50 = vsub.s32 4, %v3670_v39 }
  0x59   :  { %1975 = vmatprep.subr.bf16.mxu0 %v3114_v51  ;;  %2146 = vmatpush1.bf16.msra.mxu1 %v3109_v52  ;;  %v111_v51 = vsub.s32 5, %v3670_v39 }
  0x5a   :  { %2147 = vmatprep.subr.bf16.mxu1 %v3117_v53 }
  0x5c   :  { %1976 = vmatpush1.bf16.msra.mxu0 %v3112_v54 }
  0x5d   :  { %1977 = vmatprep.subr.bf16.mxu0 %v3120_v55  ;;  %2148 = vmatpush1.bf16.msra.mxu1 %v3115_v56 }
  0x5e   :  { %2149 = vmatprep.subr.bf16.mxu1 %v3123_v57 }
  0x60   :  { %1978 = vmatpush1.bf16.msra.mxu0 %v3118_v58 }
  0x61   :  { %1979 = vmatprep.subr.bf16.mxu0 %v3126_v59  ;;  %2150 = vmatpush1.bf16.msra.mxu1 %v3121_v60 }
  0x62   :  { %2151 = vmatprep.subr.bf16.mxu1 %v3129_v61 }
  0x64   :  { %1980 = vmatpush1.bf16.msra.mxu0 %v3124_v62 }
  0x65   :  { %1981 = vmatprep.subr.bf16.mxu0 %v3132_v0  ;;  %2152 = vmatpush1.bf16.msra.mxu1 %v3127_v63  ;;  %v108_v0 = vrot.slane %v3676_v41, %v107_v50  ;;  %v3205_v50 = vld [vmem:[#allocation4 + $0x268] ss:$16 sps:$4 sm:$0xff]  }
  0x66   :  { %2153 = vmatprep.subr.bf16.mxu1 %v3135_v2 }
  0x68   :  { %1982 = vmatpush1.bf16.msra.mxu0 %v3130_v1  ;;  %v112_v1 = vrot.slane %v3676_v41, %v111_v51  ;;  %v3210_v51 = vld [vmem:[#allocation4 + $0x284] ss:$16 sps:$4 sm:$0xff]  }
  0x69   :  { %1983 = vmatprep.subr.bf16.mxu0 %v3138_v3  ;;  %2154 = vmatpush1.bf16.msra.mxu1 %v3133_v4 }
  0x6a   :  { %2155 = vmatprep.subr.bf16.mxu1 %v3141_v5 }
  0x6c   :  { %1984 = vmatpush1.bf16.msra.mxu0 %v3136_v6 }
  0x6d   :  { %1985 = vmatprep.subr.bf16.mxu0 %v3144_v7  ;;  %2156 = vmatpush1.bf16.msra.mxu1 %v3139_v8 }
  0x6e   :  { %2157 = vmatprep.subr.bf16.mxu1 %v3147_v9 }
  0x70   :  { %1986 = vmatpush1.bf16.msra.mxu0 %v3142_v10 }
  0x71   :  { %1987 = vmatprep.subr.bf16.mxu0 %v3150_v11  ;;  %2158 = vmatpush1.bf16.msra.mxu1 %v3145_v12 }
  0x72   :  { %2159 = vmatprep.subr.bf16.mxu1 %v3153_v13 }
  0x74   :  { %1988 = vmatpush1.bf16.msra.mxu0 %v3148_v14  ;;  %v3184_v14 = vld [vmem:[#allocation4 + $0x200] ss:$16 sps:$4 sm:$0xff]  }
  0x75   :  { %1989 = vmatprep.subr.bf16.mxu0 %v3156_v15  ;;  %2160 = vmatpush1.bf16.msra.mxu1 %v3151_v16  ;;  %v3187_v15 = vld [vmem:[#allocation4 + $0x208] ss:$16 sps:$4 sm:$0xff]  }
  0x76   :  { %2161 = vmatprep.subr.bf16.mxu1 %v3159_v17 }
  0x78   :  { %1990 = vmatpush1.bf16.msra.mxu0 %v3154_v18  ;;  %v3192_v18 = vld [vmem:[#allocation4 + $0x224] ss:$16 sps:$4 sm:$0xff]  }
  0x79   :  { %1991 = vmatprep.subr.bf16.mxu0 %v3162_v19  ;;  %2162 = vmatpush1.bf16.msra.mxu1 %v3157_v20  ;;  %v3195_v19 = vld [vmem:[#allocation4 + $0x22c] ss:$16 sps:$4 sm:$0xff]  }
  0x7a   :  { %2163 = vmatprep.subr.bf16.mxu1 %v3165_v21 }
  0x7c   :  { %1992 = vmatpush1.bf16.msra.mxu0 %v3160_v22 }
  0x7d   :  { %1993 = vmatprep.subr.bf16.mxu0 %v3168_v23  ;;  %2164 = vmatpush1.bf16.msra.mxu1 %v3163_v24 }
  0x7e   :  { %2165 = vmatprep.subr.bf16.mxu1 %v3171_v25 }
  0x80   :  { %1994 = vmatpush1.bf16.msra.mxu0 %v3166_v26 }
  0x81   :  { %2166 = vmatpush1.bf16.msra.mxu1 %v3169_v27  ;;  %1995 = vmatprep.subr.bf16.mxu0 %v3174_v28 }
  0x82   :  { %2167 = vmatprep.subr.bf16.mxu1 %v3177_v29  ;;  %v3190_v29 = vld [vmem:[#allocation4 + $0x220] ss:$16 sps:$4 sm:$0xff]  }
  0x84   :  { %1996 = vmatpush1.bf16.msra.mxu0 %v3172_v30  ;;  %v3193_v30 = vld [vmem:[#allocation4 + $0x228] ss:$16 sps:$4 sm:$0xff]  }
  0x85   :  { %2168 = vmatpush1.bf16.msra.mxu1 %v3175_v31  ;;  %1997 = vmatprep.subr.bf16.mxu0 %v3180_v32 }
  0x86   :  { %2169 = vmatprep.subr.bf16.mxu1 %v3183_v33  ;;  %v3198_v33 = vld [vmem:[#allocation4 + $0x244] ss:$16 sps:$4 sm:$0xff]  }
  0x88   :  { %1998 = vmatpush1.bf16.msra.mxu0 %v3178_v34  ;;  %v3201_v34 = vld [vmem:[#allocation4 + $0x24c] ss:$16 sps:$4 sm:$0xff]  }
  0x89   :  { %2170 = vmatpush1.bf16.msra.mxu1 %v3181_v35  ;;  %2010 = vmatprep.subr.bf16.mxu0 %v3186_v36 }
  0x8a   :  { %2182 = vmatprep.subr.bf16.mxu1 %v3189_v37 }
 0x116   :  { %v247_v48 = vpop.f32.mrb[0].mxu0  ;;  %v290_v56 = vpop.f32.mrb[0].mxu1 }
 0x117   :  { %v248_v52 = vadd.f32 %v247_v48, %v92_v45  ;;  %v249_v53 = vpop.f32.mrb[1].mxu0  ;;  %v291_v59 = vadd.f32 %v290_v56, %v100_v47  ;;  %v292_v60 = vpop.f32.mrb[1].mxu1  ;;  %v3207_v48 = vld [vmem:[#allocation4 + $0x26c] ss:$16 sps:$4 sm:$0xff]  }
 0x118   :  { %v250_v54 = vadd.f32 %v249_v53, %v96_v46  ;;  %v251_v55 = vpop.f32.mrb[2].mxu0  ;;  %v293_v62 = vadd.f32 %v292_v60, %v104_v49  ;;  %v294_v63 = vpop.f32.mrb[2].mxu1  ;;  %v3208_v53 = vld [vmem:[#allocation4 + $0x280] ss:$16 sps:$4 sm:$0xff]   ;;  %v3219_v56 = vld [vmem:[#allocation4 + $0x2ac] ss:$16 sps:$4 sm:$0xff]  }
 0x119   :  { %v252_v57 = vadd.f32 %v251_v55, %v92_v45  ;;  %v253_v58 = vpop.f32.mrb[3].mxu0  ;;  %v385_v2 = vmax.f32 %v248_v52, 0.0  ;;  %v387_v4 = vmax.f32 %v291_v59, 0.0  ;;  %v295_v5 = vadd.f32 %v294_v63, %v100_v47  ;;  %v296_v6 = vpop.f32.mrb[3].mxu1  ;;  %v3199_v45 = vld [vmem:[#allocation4 + $0x248] ss:$16 sps:$4 sm:$0xff]  }
 0x11a   :  { %v254_v61 = vadd.f32 %v253_v58, %v96_v46  ;;  %v386_v7 = vmax.f32 %v250_v54, 0.0  ;;  %v388_v9 = vmax.f32 %v293_v62, 0.0  ;;  %v297_v10 = vadd.f32 %v296_v6, %v104_v49  ;;  %v3204_v47 = vld [vmem:[#allocation4 + $0x264] ss:$16 sps:$4 sm:$0xff]   ;;  %v3202_v49 = vld [vmem:[#allocation4 + $0x260] ss:$16 sps:$4 sm:$0xff]  }
 0x11b   :  { %v393_v3 = vmax.f32 %v252_v57, 0.0  ;;  %v395_v12 = vmax.f32 %v295_v5, 0.0  ;;  %v3213_v52 = vld [vmem:[#allocation4 + $0x28c] ss:$16 sps:$4 sm:$0xff]   ;;  %v3211_v54 = vld [vmem:[#allocation4 + $0x288] ss:$16 sps:$4 sm:$0xff]  }
 0x11c   :  { %v394_v8 = vmax.f32 %v254_v61, 0.0  ;;  %v396_v16 = vmax.f32 %v297_v10, 0.0  ;;  %v3216_v55 = vld [vmem:[#allocation4 + $0x2a4] ss:$16 sps:$4 sm:$0xff]   ;;  %v3214_v57 = vld [vmem:[#allocation4 + $0x2a0] ss:$16 sps:$4 sm:$0xff]  }
 0x11d   :  { %v401_v11 = vpack.c.bf16 %v393_v3, %v385_v2  ;;  %v3697_v20 = vpack.c.bf16 %v395_v12, %v387_v4  ;;  %v3217_v58 = vld [vmem:[#allocation4 + $0x2a8] ss:$16 sps:$4 sm:$0xff]   ;;  %v115_v59 = vsub.s32 6, %v3670_v39  ;;  %v119_v61 = vsub.s32 7, %v3670_v39  ;;  %v3222_v62 = vld [vmem:[#allocation4 + $0x2c4] ss:$16 sps:$4 sm:$0xff]  }
 0x11e   :  { %v402_v13 = vpack.c.bf16 %v394_v8, %v386_v7  ;;  %v333_v17 = vpop.f32.mrb[4].mxu0  ;;  %v404_v23 = vpack.c.bf16 %v396_v16, %v388_v9  ;;  %v3225_v63 = vld [vmem:[#allocation4 + $0x2cc] ss:$16 sps:$4 sm:$0xff]   ;;  %v3220_v4 = vld [vmem:[#allocation4 + $0x2c0] ss:$16 sps:$4 sm:$0xff]  }
 0x11f   :  { %v334_v21 = vadd.f32 %v333_v17, %v108_v0  ;;  %v335_v22 = vpop.f32.mrb[5].mxu0  ;;  %v376_v60 = vpop.f32.mrb[4].mxu1  ;;  %v120_v2 = vrot.slane %v3676_v41, %v119_v61  ;;  %v3223_v5 = vld [vmem:[#allocation4 + $0x2c8] ss:$16 sps:$4 sm:$0xff]   ;;  %v3228_v10 = vld [vmem:[#allocation4 + $0x2e4] ss:$16 sps:$4 sm:$0xff]  }
 0x120   :  { %1999 = vmatprep.mubr.bf16.mxu0 %v402_v13  ;;  %2171 = vmatprep.mubr.bf16.mxu1 %v402_v13  ;;  %v336_v24 = vadd.f32 %v335_v22, %v112_v1  ;;  %v337_v25 = vpop.f32.mrb[6].mxu0  ;;  %v3229_v17 = vld [vmem:[#allocation4 + $0x2e8] ss:$16 sps:$4 sm:$0xff]   ;;  %v3282_v61 = vld [vmem:[#allocation4 + $0x404] ss:$16 sps:$4 sm:$0xff]  }
 0x121   :  { %2000 = vmatmul.mubr.bf16.vlgmr.msra.gmra.mrb[8].mxu0 %v401_v11  ;;  %2172 = vmatmul.mubr.bf16.vlgmr.msra.gmra.mrb[8].mxu1 %v401_v11  ;;  %v389_v26 = vmax.f32 %v334_v21, 0.0  ;;  %v338_v27 = vadd.f32 %v337_v25, %v108_v0  ;;  %v339_v28 = vpop.f32.mrb[7].mxu0  ;;  %v378_v0 = vpop.f32.mrb[5].mxu1  ;;  %v3231_v11 = vld [vmem:[#allocation4 + $0x2ec] ss:$16 sps:$4 sm:$0xff]  }
 0x122   :  { %2011 = vmatpush1.bf16.msra.mxu0 %v3184_v14  ;;  %2183 = vmatpush1.bf16.msra.mxu1 %v3187_v15  ;;  %v390_v31 = vmax.f32 %v336_v24, 0.0  ;;  %v340_v32 = vadd.f32 %v339_v28, %v112_v1  ;;  %v116_v1 = vrot.slane %v3676_v41, %v115_v59  ;;  %v380_v3 = vpop.f32.mrb[6].mxu1  ;;  %v379_v7 = vadd.f32 %v378_v0, %v120_v2  ;;  %v3226_v41 = vld [vmem:[#allocation4 + $0x2e0] ss:$16 sps:$4 sm:$0xff]   ;;  %v3237_v21 = vld [vmem:[#allocation4 + $0x30c] ss:$16 sps:$4 sm:$0xff]  }
 0x123   :  { %2012 = vmatprep.subr.bf16.mxu0 %v3192_v18  ;;  %2184 = vmatprep.subr.bf16.mxu1 %v3195_v19  ;;  %v397_v35 = vmax.f32 %v338_v27, 0.0  ;;  %v382_v9 = vpop.f32.mrb[7].mxu1  ;;  %v3234_v19 = vld [vmem:[#allocation4 + $0x304] ss:$16 sps:$4 sm:$0xff]   ;;  %v3235_v24 = vld [vmem:[#allocation4 + $0x308] ss:$16 sps:$4 sm:$0xff]  }
 0x124   :  { %2042 = vmatprep.mubr.bf16.mxu0 %v404_v23  ;;  %2214 = vmatprep.mubr.bf16.mxu1 %v404_v23  ;;  %v398_v36 = vmax.f32 %v340_v32, 0.0  ;;  %v377_v6 = vadd.f32 %v376_v60, %v116_v1  ;;  %v381_v8 = vadd.f32 %v380_v3, %v116_v1  ;;  %v383_v12 = vadd.f32 %v382_v9, %v120_v2  ;;  %v3232_v23 = vld [vmem:[#allocation4 + $0x300] ss:$16 sps:$4 sm:$0xff]   ;;  %v3240_v25 = vld [vmem:[#allocation4 + $0x324] ss:$16 sps:$4 sm:$0xff]  }
 0x125   :  { %v3699_v37 = vpack.c.bf16 %v397_v35, %v389_v26  ;;  %v392_v14 = vmax.f32 %v379_v7, 0.0  ;;  %v3243_v26 = vld [vmem:[#allocation4 + $0x32c] ss:$16 sps:$4 sm:$0xff]   ;;  %v3238_v27 = vld [vmem:[#allocation4 + $0x320] ss:$16 sps:$4 sm:$0xff]  }
 0x126   :  { %2013 = vmatpush1.bf16.msra.mxu0 %v3190_v29  ;;  %2185 = vmatpush1.bf16.msra.mxu1 %v3193_v30  ;;  %v3701_v46 = vpack.c.bf16 %v398_v36, %v390_v31  ;;  %v391_v13 = vmax.f32 %v377_v6, 0.0  ;;  %v399_v15 = vmax.f32 %v381_v8, 0.0  ;;  %v400_v16 = vmax.f32 %v383_v12, 0.0  ;;  %v3241_v28 = vld [vmem:[#allocation4 + $0x328] ss:$16 sps:$4 sm:$0xff]  }
 0x127   :  { %2014 = vmatprep.subr.bf16.mxu0 %v3198_v33  ;;  %2186 = vmatprep.subr.bf16.mxu1 %v3201_v34  ;;  %v3246_v29 = vld [vmem:[#allocation4 + $0x344] ss:$16 sps:$4 sm:$0xff]   ;;  %v3249_v30 = vld [vmem:[#allocation4 + $0x34c] ss:$16 sps:$4 sm:$0xff]   ;;  %v3244_v31 = vld [vmem:[#allocation4 + $0x340] ss:$16 sps:$4 sm:$0xff]  }
 0x128   :  { %v3707_v18 = vpack.c.bf16 %v399_v15, %v391_v13  ;;  %v3709_v22 = vpack.c.bf16 %v400_v16, %v392_v14  ;;  %v3247_v32 = vld [vmem:[#allocation4 + $0x348] ss:$16 sps:$4 sm:$0xff]   ;;  %v3252_v33 = vld [vmem:[#allocation4 + $0x364] ss:$16 sps:$4 sm:$0xff]   ;;  %v3255_v34 = vld [vmem:[#allocation4 + $0x36c] ss:$16 sps:$4 sm:$0xff]  }
 0x129   :  { %v3250_v35 = vld [vmem:[#allocation4 + $0x360] ss:$16 sps:$4 sm:$0xff]   ;;  %v3253_v36 = vld [vmem:[#allocation4 + $0x368] ss:$16 sps:$4 sm:$0xff]   ;;  %v3288_v1 = vld [vmem:[#allocation4 + $0x424] ss:$16 sps:$4 sm:$0xff]  }
 0x12a   :  { %2015 = vmatpush1.bf16.msra.mxu0 %v3196_v38  ;;  %2187 = vmatpush1.bf16.msra.mxu1 %v3199_v45  ;;  %v3258_v38 = vld [vmem:[#allocation4 + $0x384] ss:$16 sps:$4 sm:$0xff]   ;;  %v3261_v45 = vld [vmem:[#allocation4 + $0x38c] ss:$16 sps:$4 sm:$0xff]   ;;  %v3274_v59 = vld [vmem:[#allocation4 + $0x3e0] ss:$16 sps:$4 sm:$0xff]  }
 0x12b   :  { %2016 = vmatprep.subr.bf16.mxu0 %v3204_v47  ;;  %2188 = vmatprep.subr.bf16.mxu1 %v3207_v48  ;;  %v3256_v47 = vld [vmem:[#allocation4 + $0x380] ss:$16 sps:$4 sm:$0xff]   ;;  %v3259_v48 = vld [vmem:[#allocation4 + $0x388] ss:$16 sps:$4 sm:$0xff]   ;;  %v3291_v2 = vld [vmem:[#allocation4 + $0x42c] ss:$16 sps:$4 sm:$0xff]  }
 0x12c   :  { %v3277_v60 = vld [vmem:[#allocation4 + $0x3e8] ss:$16 sps:$4 sm:$0xff]   ;;  %v3286_v3 = vld [vmem:[#allocation4 + $0x420] ss:$16 sps:$4 sm:$0xff]   ;;  %v3297_v6 = vld [vmem:[#allocation4 + $0x44c] ss:$16 sps:$4 sm:$0xff]  }
 0x12d   :  { %v3283_v0 = vld [vmem:[#allocation4 + $0x408] ss:$16 sps:$4 sm:$0xff]   ;;  %v3292_v7 = vld [vmem:[#allocation4 + $0x440] ss:$16 sps:$4 sm:$0xff]   ;;  %v3300_v9 = vld [vmem:[#allocation4 + $0x464] ss:$16 sps:$4 sm:$0xff]  }
 0x12e   :  { %2017 = vmatpush1.bf16.msra.mxu0 %v3202_v49  ;;  %2189 = vmatpush1.bf16.msra.mxu1 %v3205_v50  ;;  %v3264_v49 = vld [vmem:[#allocation4 + $0x3a4] ss:$16 sps:$4 sm:$0xff]   ;;  %v3267_v50 = vld [vmem:[#allocation4 + $0x3ac] ss:$16 sps:$4 sm:$0xff]   ;;  %v3295_v8 = vld [vmem:[#allocation4 + $0x448] ss:$16 sps:$4 sm:$0xff]  }
 0x12f   :  { %2018 = vmatprep.subr.bf16.mxu0 %v3210_v51  ;;  %2190 = vmatprep.subr.bf16.mxu1 %v3213_v52  ;;  %v3262_v51 = vld [vmem:[#allocation4 + $0x3a0] ss:$16 sps:$4 sm:$0xff]   ;;  %v3265_v52 = vld [vmem:[#allocation4 + $0x3a8] ss:$16 sps:$4 sm:$0xff]   ;;  %v3306_v12 = vld [vmem:[#allocation4 + $0x484] ss:$16 sps:$4 sm:$0xff]  }
 0x130   :  { %v3309_v13 = vld [vmem:[#allocation4 + $0x48c] ss:$16 sps:$4 sm:$0xff]   ;;  %v3304_v14 = vld [vmem:[#allocation4 + $0x480] ss:$16 sps:$4 sm:$0xff]   ;;  %v3312_v15 = vld [vmem:[#allocation4 + $0x4a4] ss:$16 sps:$4 sm:$0xff]  }
 0x131   :  { %v3315_v16 = vld [vmem:[#allocation4 + $0x4ac] ss:$16 sps:$4 sm:$0xff]  }
 0x132   :  { %2019 = vmatpush1.bf16.msra.mxu0 %v3208_v53  ;;  %2191 = vmatpush1.bf16.msra.mxu1 %v3211_v54  ;;  %v3270_v53 = vld [vmem:[#allocation4 + $0x3c4] ss:$16 sps:$4 sm:$0xff]   ;;  %v3273_v54 = vld [vmem:[#allocation4 + $0x3cc] ss:$16 sps:$4 sm:$0xff]  }
 0x133   :  { %2020 = vmatprep.subr.bf16.mxu0 %v3216_v55  ;;  %2192 = vmatprep.subr.bf16.mxu1 %v3219_v56  ;;  %v3268_v55 = vld [vmem:[#allocation4 + $0x3c0] ss:$16 sps:$4 sm:$0xff]   ;;  %v3271_v56 = vld [vmem:[#allocation4 + $0x3c8] ss:$16 sps:$4 sm:$0xff]  }
 0x136   :  { %2021 = vmatpush1.bf16.msra.mxu0 %v3214_v57  ;;  %2193 = vmatpush1.bf16.msra.mxu1 %v3217_v58  ;;  %v3276_v57 = vld [vmem:[#allocation4 + $0x3e4] ss:$16 sps:$4 sm:$0xff]   ;;  %v3279_v58 = vld [vmem:[#allocation4 + $0x3ec] ss:$16 sps:$4 sm:$0xff]  }
 0x137   :  { %2022 = vmatprep.subr.bf16.mxu0 %v3222_v62  ;;  %2194 = vmatprep.subr.bf16.mxu1 %v3225_v63  ;;  %v3285_v62 = vld [vmem:[#allocation4 + $0x40c] ss:$16 sps:$4 sm:$0xff]   ;;  %v3280_v63 = vld [vmem:[#allocation4 + $0x400] ss:$16 sps:$4 sm:$0xff]  }
 0x13a   :  { %2023 = vmatpush1.bf16.msra.mxu0 %v3220_v4  ;;  %2195 = vmatpush1.bf16.msra.mxu1 %v3223_v5  ;;  %v3289_v4 = vld [vmem:[#allocation4 + $0x428] ss:$16 sps:$4 sm:$0xff]   ;;  %v3294_v5 = vld [vmem:[#allocation4 + $0x444] ss:$16 sps:$4 sm:$0xff]  }
 0x13b   :  { %2024 = vmatprep.subr.bf16.mxu0 %v3228_v10  ;;  %2196 = vmatprep.subr.bf16.mxu1 %v3231_v11  ;;  %v3298_v10 = vld [vmem:[#allocation4 + $0x460] ss:$16 sps:$4 sm:$0xff]   ;;  %v3301_v11 = vld [vmem:[#allocation4 + $0x468] ss:$16 sps:$4 sm:$0xff]  }
 0x13e   :  { %2025 = vmatpush1.bf16.msra.mxu0 %v3226_v41  ;;  %2197 = vmatpush1.bf16.msra.mxu1 %v3229_v17  ;;  %v3310_v41 = vld [vmem:[#allocation4 + $0x4a0] ss:$16 sps:$4 sm:$0xff]   ;;  %v3313_v17 = vld [vmem:[#allocation4 + $0x4a8] ss:$16 sps:$4 sm:$0xff]  }
 0x13f   :  { %2026 = vmatprep.subr.bf16.mxu0 %v3234_v19  ;;  %2198 = vmatprep.subr.bf16.mxu1 %v3237_v21  ;;  %v3318_v19 = vld [vmem:[#allocation4 + $0x4c4] ss:$16 sps:$4 sm:$0xff]   ;;  %v3321_v21 = vld [vmem:[#allocation4 + $0x4cc] ss:$16 sps:$4 sm:$0xff]  }
 0x142   :  { %2027 = vmatpush1.bf16.msra.mxu0 %v3232_v23  ;;  %2199 = vmatpush1.bf16.msra.mxu1 %v3235_v24  ;;  %v3316_v23 = vld [vmem:[#allocation4 + $0x4c0] ss:$16 sps:$4 sm:$0xff]   ;;  %v3319_v24 = vld [vmem:[#allocation4 + $0x4c8] ss:$16 sps:$4 sm:$0xff]  }
 0x143   :  { %2028 = vmatprep.subr.bf16.mxu0 %v3240_v25  ;;  %2200 = vmatprep.subr.bf16.mxu1 %v3243_v26  ;;  %v3324_v25 = vld [vmem:[#allocation4 + $0x4e4] ss:$16 sps:$4 sm:$0xff]   ;;  %v3327_v26 = vld [vmem:[#allocation4 + $0x4ec] ss:$16 sps:$4 sm:$0xff]  }
 0x146   :  { %2029 = vmatpush1.bf16.msra.mxu0 %v3238_v27  ;;  %2201 = vmatpush1.bf16.msra.mxu1 %v3241_v28  ;;  %v3322_v27 = vld [vmem:[#allocation4 + $0x4e0] ss:$16 sps:$4 sm:$0xff]   ;;  %v3325_v28 = vld [vmem:[#allocation4 + $0x4e8] ss:$16 sps:$4 sm:$0xff]  }
 0x147   :  { %2030 = vmatprep.subr.bf16.mxu0 %v3246_v29  ;;  %2202 = vmatprep.subr.bf16.mxu1 %v3249_v30  ;;  %v3330_v29 = vld [vmem:[#allocation4 + $0x504] ss:$16 sps:$4 sm:$0xff]   ;;  %v3333_v30 = vld [vmem:[#allocation4 + $0x50c] ss:$16 sps:$4 sm:$0xff]  }
 0x14a   :  { %2031 = vmatpush1.bf16.msra.mxu0 %v3244_v31  ;;  %2203 = vmatpush1.bf16.msra.mxu1 %v3247_v32  ;;  %v3328_v31 = vld [vmem:[#allocation4 + $0x500] ss:$16 sps:$4 sm:$0xff]   ;;  %v3331_v32 = vld [vmem:[#allocation4 + $0x508] ss:$16 sps:$4 sm:$0xff]  }
 0x14b   :  { %2032 = vmatprep.subr.bf16.mxu0 %v3252_v33  ;;  %2204 = vmatprep.subr.bf16.mxu1 %v3255_v34  ;;  %v3336_v33 = vld [vmem:[#allocation4 + $0x524] ss:$16 sps:$4 sm:$0xff]   ;;  %v3339_v34 = vld [vmem:[#allocation4 + $0x52c] ss:$16 sps:$4 sm:$0xff]  }
 0x14e   :  { %2033 = vmatpush1.bf16.msra.mxu0 %v3250_v35  ;;  %2205 = vmatpush1.bf16.msra.mxu1 %v3253_v36  ;;  %v3334_v35 = vld [vmem:[#allocation4 + $0x520] ss:$16 sps:$4 sm:$0xff]   ;;  %v3337_v36 = vld [vmem:[#allocation4 + $0x528] ss:$16 sps:$4 sm:$0xff]  }
 0x14f   :  { %2034 = vmatprep.subr.bf16.mxu0 %v3258_v38  ;;  %2206 = vmatprep.subr.bf16.mxu1 %v3261_v45  ;;  %v3342_v38 = vld [vmem:[#allocation4 + $0x544] ss:$16 sps:$4 sm:$0xff]   ;;  %v3345_v45 = vld [vmem:[#allocation4 + $0x54c] ss:$16 sps:$4 sm:$0xff]  }
 0x152   :  { %2035 = vmatpush1.bf16.msra.mxu0 %v3256_v47  ;;  %2207 = vmatpush1.bf16.msra.mxu1 %v3259_v48  ;;  %v3340_v47 = vld [vmem:[#allocation4 + $0x540] ss:$16 sps:$4 sm:$0xff]   ;;  %v3343_v48 = vld [vmem:[#allocation4 + $0x548] ss:$16 sps:$4 sm:$0xff]  }
 0x153   :  { %2036 = vmatprep.subr.bf16.mxu0 %v3264_v49  ;;  %2208 = vmatprep.subr.bf16.mxu1 %v3267_v50  ;;  %v3348_v49 = vld [vmem:[#allocation4 + $0x564] ss:$16 sps:$4 sm:$0xff]   ;;  %v3351_v50 = vld [vmem:[#allocation4 + $0x56c] ss:$16 sps:$4 sm:$0xff]  }
 0x156   :  { %2037 = vmatpush1.bf16.msra.mxu0 %v3262_v51  ;;  %2209 = vmatpush1.bf16.msra.mxu1 %v3265_v52  ;;  %v3346_v51 = vld [vmem:[#allocation4 + $0x560] ss:$16 sps:$4 sm:$0xff]   ;;  %v3349_v52 = vld [vmem:[#allocation4 + $0x568] ss:$16 sps:$4 sm:$0xff]  }
 0x157   :  { %2038 = vmatprep.subr.bf16.mxu0 %v3270_v53  ;;  %2210 = vmatprep.subr.bf16.mxu1 %v3273_v54  ;;  %v3354_v53 = vld [vmem:[#allocation4 + $0x584] ss:$16 sps:$4 sm:$0xff]   ;;  %v3357_v54 = vld [vmem:[#allocation4 + $0x58c] ss:$16 sps:$4 sm:$0xff]  }
 0x15a   :  { %2039 = vmatpush1.bf16.msra.mxu0 %v3268_v55  ;;  %2211 = vmatpush1.bf16.msra.mxu1 %v3271_v56  ;;  %v3352_v55 = vld [vmem:[#allocation4 + $0x580] ss:$16 sps:$4 sm:$0xff]   ;;  %v3355_v56 = vld [vmem:[#allocation4 + $0x588] ss:$16 sps:$4 sm:$0xff]  }
 0x15b   :  { %2040 = vmatprep.subr.bf16.mxu0 %v3276_v57  ;;  %2212 = vmatprep.subr.bf16.mxu1 %v3279_v58  ;;  %v3360_v57 = vld [vmem:[#allocation4 + $0x5a4] ss:$16 sps:$4 sm:$0xff]   ;;  %v3363_v58 = vld [vmem:[#allocation4 + $0x5ac] ss:$16 sps:$4 sm:$0xff]  }
 0x15e   :  { %2041 = vmatpush1.bf16.msra.mxu0 %v3274_v59  ;;  %2213 = vmatpush1.bf16.msra.mxu1 %v3277_v60  ;;  %v3358_v59 = vld [vmem:[#allocation4 + $0x5a0] ss:$16 sps:$4 sm:$0xff]   ;;  %v3361_v60 = vld [vmem:[#allocation4 + $0x5a8] ss:$16 sps:$4 sm:$0xff]  }
 0x15f   :  { %2053 = vmatprep.subr.bf16.mxu0 %v3282_v61  ;;  %2225 = vmatprep.subr.bf16.mxu1 %v3285_v62  ;;  %v3366_v61 = vld [vmem:[#allocation4 + $0x5c4] ss:$16 sps:$4 sm:$0xff]   ;;  %v3369_v62 = vld [vmem:[#allocation4 + $0x5cc] ss:$16 sps:$4 sm:$0xff]  }
 0x161   :  { %2043 = vmatmul.mubr.bf16.vlgmr.msra.gmra.mrb[8].mxu0 %v3697_v20  ;;  %2215 = vmatmul.mubr.bf16.vlgmr.msra.gmra.mrb[8].mxu1 %v3697_v20  ;;  %v3303_v20 = vld [vmem:[#allocation4 + $0x46c] ss:$16 sps:$4 sm:$0xff]  }
 0x162   :  { %2054 = vmatpush1.bf16.msra.mxu0 %v3280_v63  ;;  %2226 = vmatpush1.bf16.msra.mxu1 %v3283_v0  ;;  %v3364_v63 = vld [vmem:[#allocation4 + $0x5c0] ss:$16 sps:$4 sm:$0xff]   ;;  %v3367_v0 = vld [vmem:[#allocation4 + $0x5c8] ss:$16 sps:$4 sm:$0xff]  }
 0x163   :  { %2055 = vmatprep.subr.bf16.mxu0 %v3288_v1  ;;  %2227 = vmatprep.subr.bf16.mxu1 %v3291_v2  ;;  %v3372_v1 = vld [vmem:[#allocation4 + $0x5e4] ss:$16 sps:$4 sm:$0xff]   ;;  %v3375_v2 = vld [vmem:[#allocation4 + $0x5ec] ss:$16 sps:$4 sm:$0xff]  }
 0x164   :  { %2085 = vmatprep.mubr.bf16.mxu0 %v3701_v46  ;;  %2257 = vmatprep.mubr.bf16.mxu1 %v3701_v46  ;;  %v3307_v46 = vld [vmem:[#allocation4 + $0x488] ss:$16 sps:$4 sm:$0xff]  }
 0x166   :  { %2056 = vmatpush1.bf16.msra.mxu0 %v3286_v3  ;;  %2228 = vmatpush1.bf16.msra.mxu1 %v3289_v4  ;;  %v3370_v3 = vld [vmem:[#allocation4 + $0x5e0] ss:$16 sps:$4 sm:$0xff]   ;;  %v3373_v4 = vld [vmem:[#allocation4 + $0x5e8] ss:$16 sps:$4 sm:$0xff]  }
 0x167   :  { %2057 = vmatprep.subr.bf16.mxu0 %v3294_v5  ;;  %2229 = vmatprep.subr.bf16.mxu1 %v3297_v6  ;;  %v3378_v5 = vld [vmem:[#allocation4 + $0x604] ss:$16 sps:$4 sm:$0xff]   ;;  %v3381_v6 = vld [vmem:[#allocation4 + $0x60c] ss:$16 sps:$4 sm:$0xff]  }
 0x16a   :  { %2058 = vmatpush1.bf16.msra.mxu0 %v3292_v7  ;;  %2230 = vmatpush1.bf16.msra.mxu1 %v3295_v8  ;;  %v3376_v7 = vld [vmem:[#allocation4 + $0x600] ss:$16 sps:$4 sm:$0xff]   ;;  %v3379_v8 = vld [vmem:[#allocation4 + $0x608] ss:$16 sps:$4 sm:$0xff]  }
 0x16b   :  { %2059 = vmatprep.subr.bf16.mxu0 %v3300_v9  ;;  %2231 = vmatprep.subr.bf16.mxu1 %v3303_v20  ;;  %v3384_v9 = vld [vmem:[#allocation4 + $0x624] ss:$16 sps:$4 sm:$0xff]   ;;  %v3387_v20 = vld [vmem:[#allocation4 + $0x62c] ss:$16 sps:$4 sm:$0xff]  }
 0x16e   :  { %2060 = vmatpush1.bf16.msra.mxu0 %v3298_v10  ;;  %2232 = vmatpush1.bf16.msra.mxu1 %v3301_v11  ;;  %v3382_v10 = vld [vmem:[#allocation4 + $0x620] ss:$16 sps:$4 sm:$0xff]   ;;  %v3385_v11 = vld [vmem:[#allocation4 + $0x628] ss:$16 sps:$4 sm:$0xff]  }
 0x16f   :  { %2061 = vmatprep.subr.bf16.mxu0 %v3306_v12  ;;  %2233 = vmatprep.subr.bf16.mxu1 %v3309_v13  ;;  %v3390_v12 = vld [vmem:[#allocation4 + $0x644] ss:$16 sps:$4 sm:$0xff]   ;;  %v3393_v13 = vld [vmem:[#allocation4 + $0x64c] ss:$16 sps:$4 sm:$0xff]  }
 0x172   :  { %2062 = vmatpush1.bf16.msra.mxu0 %v3304_v14  ;;  %2234 = vmatpush1.bf16.msra.mxu1 %v3307_v46  ;;  %v3388_v14 = vld [vmem:[#allocation4 + $0x640] ss:$16 sps:$4 sm:$0xff]   ;;  %v3391_v46 = vld [vmem:[#allocation4 + $0x648] ss:$16 sps:$4 sm:$0xff]  }
 0x173   :  { %2063 = vmatprep.subr.bf16.mxu0 %v3312_v15  ;;  %2235 = vmatprep.subr.bf16.mxu1 %v3315_v16  ;;  %v3396_v15 = vld [vmem:[#allocation4 + $0x664] ss:$16 sps:$4 sm:$0xff]   ;;  %v3394_v16 = vld [vmem:[#allocation4 + $0x660] ss:$16 sps:$4 sm:$0xff]  }
 0x176   :  { %2064 = vmatpush1.bf16.msra.mxu0 %v3310_v41  ;;  %2236 = vmatpush1.bf16.msra.mxu1 %v3313_v17  ;;  %v3397_v41 = vld [vmem:[#allocation4 + $0x668] ss:$16 sps:$4 sm:$0xff]   ;;  %v3402_v17 = vld [vmem:[#allocation4 + $0x684] ss:$16 sps:$4 sm:$0xff]  }
 0x177   :  { %2065 = vmatprep.subr.bf16.mxu0 %v3318_v19  ;;  %2237 = vmatprep.subr.bf16.mxu1 %v3321_v21  ;;  %v3405_v19 = vld [vmem:[#allocation4 + $0x68c] ss:$16 sps:$4 sm:$0xff]   ;;  %v3400_v21 = vld [vmem:[#allocation4 + $0x680] ss:$16 sps:$4 sm:$0xff]  }
 0x17a   :  { %2066 = vmatpush1.bf16.msra.mxu0 %v3316_v23  ;;  %2238 = vmatpush1.bf16.msra.mxu1 %v3319_v24  ;;  %v3408_v23 = vld [vmem:[#allocation4 + $0x6a4] ss:$16 sps:$4 sm:$0xff]   ;;  %v3411_v24 = vld [vmem:[#allocation4 + $0x6ac] ss:$16 sps:$4 sm:$0xff]  }
 0x17b   :  { %2067 = vmatprep.subr.bf16.mxu0 %v3324_v25  ;;  %2239 = vmatprep.subr.bf16.mxu1 %v3327_v26  ;;  %v3406_v25 = vld [vmem:[#allocation4 + $0x6a0] ss:$16 sps:$4 sm:$0xff]   ;;  %v3409_v26 = vld [vmem:[#allocation4 + $0x6a8] ss:$16 sps:$4 sm:$0xff]  }
 0x17e   :  { %2068 = vmatpush1.bf16.msra.mxu0 %v3322_v27  ;;  %2240 = vmatpush1.bf16.msra.mxu1 %v3325_v28  ;;  %v3414_v27 = vld [vmem:[#allocation4 + $0x6c4] ss:$16 sps:$4 sm:$0xff]   ;;  %v3417_v28 = vld [vmem:[#allocation4 + $0x6cc] ss:$16 sps:$4 sm:$0xff]  }
 0x17f   :  { %2069 = vmatprep.subr.bf16.mxu0 %v3330_v29  ;;  %2241 = vmatprep.subr.bf16.mxu1 %v3333_v30  ;;  %v3412_v29 = vld [vmem:[#allocation4 + $0x6c0] ss:$16 sps:$4 sm:$0xff]   ;;  %v3415_v30 = vld [vmem:[#allocation4 + $0x6c8] ss:$16 sps:$4 sm:$0xff]  }
 0x182   :  { %2070 = vmatpush1.bf16.msra.mxu0 %v3328_v31  ;;  %2242 = vmatpush1.bf16.msra.mxu1 %v3331_v32  ;;  %v3420_v31 = vld [vmem:[#allocation4 + $0x6e4] ss:$16 sps:$4 sm:$0xff]   ;;  %v3423_v32 = vld [vmem:[#allocation4 + $0x6ec] ss:$16 sps:$4 sm:$0xff]  }
 0x183   :  { %2071 = vmatprep.subr.bf16.mxu0 %v3336_v33  ;;  %2243 = vmatprep.subr.bf16.mxu1 %v3339_v34  ;;  %v3418_v33 = vld [vmem:[#allocation4 + $0x6e0] ss:$16 sps:$4 sm:$0xff]   ;;  %v3421_v34 = vld [vmem:[#allocation4 + $0x6e8] ss:$16 sps:$4 sm:$0xff]  }
 0x186   :  { %2072 = vmatpush1.bf16.msra.mxu0 %v3334_v35  ;;  %2244 = vmatpush1.bf16.msra.mxu1 %v3337_v36  ;;  %v3426_v35 = vld [vmem:[#allocation4 + $0x704] ss:$16 sps:$4 sm:$0xff]   ;;  %v3429_v36 = vld [vmem:[#allocation4 + $0x70c] ss:$16 sps:$4 sm:$0xff]  }
 0x187   :  { %2073 = vmatprep.subr.bf16.mxu0 %v3342_v38  ;;  %2245 = vmatprep.subr.bf16.mxu1 %v3345_v45  ;;  %v3424_v38 = vld [vmem:[#allocation4 + $0x700] ss:$16 sps:$4 sm:$0xff]   ;;  %v3427_v45 = vld [vmem:[#allocation4 + $0x708] ss:$16 sps:$4 sm:$0xff]  }
 0x18a   :  { %2074 = vmatpush1.bf16.msra.mxu0 %v3340_v47  ;;  %2246 = vmatpush1.bf16.msra.mxu1 %v3343_v48  ;;  %v3432_v47 = vld [vmem:[#allocation4 + $0x724] ss:$16 sps:$4 sm:$0xff]   ;;  %v3435_v48 = vld [vmem:[#allocation4 + $0x72c] ss:$16 sps:$4 sm:$0xff]  }
 0x18b   :  { %2075 = vmatprep.subr.bf16.mxu0 %v3348_v49  ;;  %2247 = vmatprep.subr.bf16.mxu1 %v3351_v50  ;;  %v3430_v49 = vld [vmem:[#allocation4 + $0x720] ss:$16 sps:$4 sm:$0xff]   ;;  %v3433_v50 = vld [vmem:[#allocation4 + $0x728] ss:$16 sps:$4 sm:$0xff]  }
 0x18e   :  { %2076 = vmatpush1.bf16.msra.mxu0 %v3346_v51  ;;  %2248 = vmatpush1.bf16.msra.mxu1 %v3349_v52  ;;  %v3438_v51 = vld [vmem:[#allocation4 + $0x744] ss:$16 sps:$4 sm:$0xff]   ;;  %v3441_v52 = vld [vmem:[#allocation4 + $0x74c] ss:$16 sps:$4 sm:$0xff]  }
 0x18f   :  { %2077 = vmatprep.subr.bf16.mxu0 %v3354_v53  ;;  %2249 = vmatprep.subr.bf16.mxu1 %v3357_v54  ;;  %v3436_v53 = vld [vmem:[#allocation4 + $0x740] ss:$16 sps:$4 sm:$0xff]   ;;  %v3439_v54 = vld [vmem:[#allocation4 + $0x748] ss:$16 sps:$4 sm:$0xff]  }
 0x192   :  { %2078 = vmatpush1.bf16.msra.mxu0 %v3352_v55  ;;  %2250 = vmatpush1.bf16.msra.mxu1 %v3355_v56  ;;  %v3444_v55 = vld [vmem:[#allocation4 + $0x764] ss:$16 sps:$4 sm:$0xff]   ;;  %v3447_v56 = vld [vmem:[#allocation4 + $0x76c] ss:$16 sps:$4 sm:$0xff]  }
 0x193   :  { %2079 = vmatprep.subr.bf16.mxu0 %v3360_v57  ;;  %2251 = vmatprep.subr.bf16.mxu1 %v3363_v58  ;;  %v3442_v57 = vld [vmem:[#allocation4 + $0x760] ss:$16 sps:$4 sm:$0xff]   ;;  %v3445_v58 = vld [vmem:[#allocation4 + $0x768] ss:$16 sps:$4 sm:$0xff]  }
 0x196   :  { %2080 = vmatpush1.bf16.msra.mxu0 %v3358_v59  ;;  %2252 = vmatpush1.bf16.msra.mxu1 %v3361_v60  ;;  %v3450_v59 = vld [vmem:[#allocation4 + $0x784] ss:$16 sps:$4 sm:$0xff]   ;;  %v3453_v60 = vld [vmem:[#allocation4 + $0x78c] ss:$16 sps:$4 sm:$0xff]  }
 0x197   :  { %2081 = vmatprep.subr.bf16.mxu0 %v3366_v61  ;;  %2253 = vmatprep.subr.bf16.mxu1 %v3369_v62  ;;  %v3448_v61 = vld [vmem:[#allocation4 + $0x780] ss:$16 sps:$4 sm:$0xff]   ;;  %v3451_v62 = vld [vmem:[#allocation4 + $0x788] ss:$16 sps:$4 sm:$0xff]  }
 0x19a   :  { %2082 = vmatpush1.bf16.msra.mxu0 %v3364_v63  ;;  %2254 = vmatpush1.bf16.msra.mxu1 %v3367_v0  ;;  %v3456_v63 = vld [vmem:[#allocation4 + $0x7a4] ss:$16 sps:$4 sm:$0xff]   ;;  %v3459_v0 = vld [vmem:[#allocation4 + $0x7ac] ss:$16 sps:$4 sm:$0xff]  }
 0x19b   :  { %2083 = vmatprep.subr.bf16.mxu0 %v3372_v1  ;;  %2255 = vmatprep.subr.bf16.mxu1 %v3375_v2  ;;  %v3454_v1 = vld [vmem:[#allocation4 + $0x7a0] ss:$16 sps:$4 sm:$0xff]   ;;  %v3457_v2 = vld [vmem:[#allocation4 + $0x7a8] ss:$16 sps:$4 sm:$0xff]  }
 0x19e   :  { %2084 = vmatpush1.bf16.msra.mxu0 %v3370_v3  ;;  %2256 = vmatpush1.bf16.msra.mxu1 %v3373_v4  ;;  %v3462_v3 = vld [vmem:[#allocation4 + $0x7c4] ss:$16 sps:$4 sm:$0xff]   ;;  %v3465_v4 = vld [vmem:[#allocation4 + $0x7cc] ss:$16 sps:$4 sm:$0xff]  }
 0x19f   :  { %2096 = vmatprep.subr.bf16.mxu0 %v3378_v5  ;;  %2268 = vmatprep.subr.bf16.mxu1 %v3381_v6  ;;  %v3460_v5 = vld [vmem:[#allocation4 + $0x7c0] ss:$16 sps:$4 sm:$0xff]   ;;  %v3463_v6 = vld [vmem:[#allocation4 + $0x7c8] ss:$16 sps:$4 sm:$0xff]  }
 0x1a1   :  { %2086 = vmatmul.mubr.bf16.vlgmr.msra.gmra.mrb[8].mxu0 %v3699_v37  ;;  %2258 = vmatmul.mubr.bf16.vlgmr.msra.gmra.mrb[8].mxu1 %v3699_v37  ;;  %v3399_v37 = vld [vmem:[#allocation4 + $0x66c] ss:$16 sps:$4 sm:$0xff]  }
 0x1a2   :  { %2097 = vmatpush1.bf16.msra.mxu0 %v3376_v7  ;;  %2269 = vmatpush1.bf16.msra.mxu1 %v3379_v8  ;;  %v3468_v7 = vld [vmem:[#allocation4 + $0x7e4] ss:$16 sps:$4 sm:$0xff]   ;;  %v3471_v8 = vld [vmem:[#allocation4 + $0x7ec] ss:$16 sps:$4 sm:$0xff]  }
 0x1a3   :  { %2098 = vmatprep.subr.bf16.mxu0 %v3384_v9  ;;  %2270 = vmatprep.subr.bf16.mxu1 %v3387_v20  ;;  %v3466_v9 = vld [vmem:[#allocation4 + $0x7e0] ss:$16 sps:$4 sm:$0xff]   ;;  %v3469_v20 = vld [vmem:[#allocation4 + $0x7e8] ss:$16 sps:$4 sm:$0xff]  }
 0x1a4   :  { %2128 = vmatprep.mubr.bf16.mxu0 %v3709_v22  ;;  %2300 = vmatprep.mubr.bf16.mxu1 %v3709_v22  ;;  %v3403_v22 = vld [vmem:[#allocation4 + $0x688] ss:$16 sps:$4 sm:$0xff]  }
 0x1a6   :  { %2099 = vmatpush1.bf16.msra.mxu0 %v3382_v10  ;;  %2271 = vmatpush1.bf16.msra.mxu1 %v3385_v11  ;;  %v3472_v10 = vld [vmem:[#allocation6 + $0x40] sm:$0xff]  }
 0x1a7   :  { %2100 = vmatprep.subr.bf16.mxu0 %v3390_v12  ;;  %2272 = vmatprep.subr.bf16.mxu1 %v3393_v13  ;;  %v3473_v11 = vld [vmem:[#allocation6 + $0xc0] sm:$0xff]  }
 0x1a8   :  { %v3474_v12 = vld [vmem:[#allocation6] sm:$0xff]  }
 0x1a9   :  { %v3475_v13 = vld [vmem:[#allocation6 + $0x80] sm:$0xff]  }
 0x1aa   :  { %2101 = vmatpush1.bf16.msra.mxu0 %v3388_v14  ;;  %2273 = vmatpush1.bf16.msra.mxu1 %v3391_v46  ;;  %v3476_v14 = vld [vmem:[#allocation6 + $0x48] sm:$0xff]  }
 0x1ab   :  { %2102 = vmatprep.subr.bf16.mxu0 %v3396_v15  ;;  %2274 = vmatprep.subr.bf16.mxu1 %v3399_v37  ;;  %v3477_v46 = vld [vmem:[#allocation6 + $0xc8] sm:$0xff]  }
 0x1ac   :  { %v3478_v15 = vld [vmem:[#allocation6 + $0x8] sm:$0xff]  }
 0x1ad   :  { %v3479_v37 = vld [vmem:[#allocation6 + $0x88] sm:$0xff]  }
 0x1ae   :  { %2103 = vmatpush1.bf16.msra.mxu0 %v3394_v16  ;;  %2275 = vmatpush1.bf16.msra.mxu1 %v3397_v41  ;;  %v3480_v16 = vld [vmem:[#allocation6 + $0x50] sm:$0xff]  }
 0x1af   :  { %2104 = vmatprep.subr.bf16.mxu0 %v3402_v17  ;;  %2276 = vmatprep.subr.bf16.mxu1 %v3405_v19  ;;  %v3481_v41 = vld [vmem:[#allocation6 + $0xd0] sm:$0xff]  }
 0x1b0   :  { %v3482_v17 = vld [vmem:[#allocation6 + $0x10] sm:$0xff]  }
 0x1b1   :  { %v3483_v19 = vld [vmem:[#allocation6 + $0x90] sm:$0xff]  }
 0x1b2   :  { %2105 = vmatpush1.bf16.msra.mxu0 %v3400_v21  ;;  %2277 = vmatpush1.bf16.msra.mxu1 %v3403_v22  ;;  %v3484_v21 = vld [vmem:[#allocation6 + $0x58] sm:$0xff]  }
 0x1b3   :  { %2106 = vmatprep.subr.bf16.mxu0 %v3408_v23  ;;  %2278 = vmatprep.subr.bf16.mxu1 %v3411_v24  ;;  %v3485_v22 = vld [vmem:[#allocation6 + $0xd8] sm:$0xff]   ;;  %v3488_v24 = vld [vmem:[#allocation6 + $0x60] sm:$0xff]  }
 0x1b4   :  { %v3486_v23 = vld [vmem:[#allocation6 + $0x18] sm:$0xff]  }
 0x1b6   :  { %2107 = vmatpush1.bf16.msra.mxu0 %v3406_v25  ;;  %2279 = vmatpush1.bf16.msra.mxu1 %v3409_v26  ;;  %v3489_v25 = vld [vmem:[#allocation6 + $0xe0] sm:$0xff]  }
 0x1b7   :  { %2108 = vmatprep.subr.bf16.mxu0 %v3414_v27  ;;  %2280 = vmatprep.subr.bf16.mxu1 %v3417_v28  ;;  %v3490_v26 = vld [vmem:[#allocation6 + $0x20] sm:$0xff]   ;;  %v3492_v28 = vld [vmem:[#allocation6 + $0x68] sm:$0xff]  }
 0x1b8   :  { %v3491_v27 = vld [vmem:[#allocation6 + $0xa0] sm:$0xff]  }
 0x1ba   :  { %2109 = vmatpush1.bf16.msra.mxu0 %v3412_v29  ;;  %2281 = vmatpush1.bf16.msra.mxu1 %v3415_v30  ;;  %v3493_v29 = vld [vmem:[#allocation6 + $0xe8] sm:$0xff]  }
 0x1bb   :  { %2110 = vmatprep.subr.bf16.mxu0 %v3420_v31  ;;  %2282 = vmatprep.subr.bf16.mxu1 %v3423_v32  ;;  %v3494_v30 = vld [vmem:[#allocation6 + $0x28] sm:$0xff]   ;;  %v3496_v32 = vld [vmem:[#allocation6 + $0x70] sm:$0xff]  }
 0x1bc   :  { %v3495_v31 = vld [vmem:[#allocation6 + $0xa8] sm:$0xff]  }
 0x1be   :  { %2111 = vmatpush1.bf16.msra.mxu0 %v3418_v33  ;;  %2283 = vmatpush1.bf16.msra.mxu1 %v3421_v34  ;;  %v3497_v33 = vld [vmem:[#allocation6 + $0xf0] sm:$0xff]  }
 0x1bf   :  { %2112 = vmatprep.subr.bf16.mxu0 %v3426_v35  ;;  %2284 = vmatprep.subr.bf16.mxu1 %v3429_v36  ;;  %v3498_v34 = vld [vmem:[#allocation6 + $0x30] sm:$0xff]   ;;  %v3500_v36 = vld [vmem:[#allocation6 + $0x78] sm:$0xff]  }
 0x1c0   :  { %v3499_v35 = vld [vmem:[#allocation6 + $0xb0] sm:$0xff]  }
 0x1c2   :  { %2113 = vmatpush1.bf16.msra.mxu0 %v3424_v38  ;;  %2285 = vmatpush1.bf16.msra.mxu1 %v3427_v45  ;;  %v3501_v38 = vld [vmem:[#allocation6 + $0xf8] sm:$0xff]  }
 0x1c3   :  { %2114 = vmatprep.subr.bf16.mxu0 %v3432_v47  ;;  %2286 = vmatprep.subr.bf16.mxu1 %v3435_v48  ;;  %v3502_v45 = vld [vmem:[#allocation6 + $0x38] sm:$0xff]   ;;  %v665_v48 = vld [vmem:[%s3742_s4] sm:$0xf] }
 0x1c4   :  { %v3503_v47 = vld [vmem:[#allocation6 + $0xb8] sm:$0xff]  }
 0x1c6   :  { %2115 = vmatpush1.bf16.msra.mxu0 %v3430_v49  ;;  %2287 = vmatpush1.bf16.msra.mxu1 %v3433_v50  ;;  %v670_v49 = vrot.slane %v665_v48, %v91_v40  ;;  %v678_v50 = vrot.slane %v665_v48, %v99_v43 }
 0x1c7   :  { %2116 = vmatprep.subr.bf16.mxu0 %v3438_v51  ;;  %2288 = vmatprep.subr.bf16.mxu1 %v3441_v52  ;;  %v674_v51 = vrot.slane %v665_v48, %v95_v42  ;;  %v682_v52 = vrot.slane %v665_v48, %v103_v44 }
 0x1ca   :  { %2117 = vmatpush1.bf16.msra.mxu0 %v3436_v53  ;;  %2289 = vmatpush1.bf16.msra.mxu1 %v3439_v54 }
 0x1cb   :  { %2118 = vmatprep.subr.bf16.mxu0 %v3444_v55  ;;  %2290 = vmatprep.subr.bf16.mxu1 %v3447_v56 }
 0x1ce   :  { %2119 = vmatpush1.bf16.msra.mxu0 %v3442_v57  ;;  %2291 = vmatpush1.bf16.msra.mxu1 %v3445_v58 }
 0x1cf   :  { %2120 = vmatprep.subr.bf16.mxu0 %v3450_v59  ;;  %2292 = vmatprep.subr.bf16.mxu1 %v3453_v60 }
 0x1d2   :  { %2121 = vmatpush1.bf16.msra.mxu0 %v3448_v61  ;;  %2293 = vmatpush1.bf16.msra.mxu1 %v3451_v62 }
 0x1d3   :  { %2122 = vmatprep.subr.bf16.mxu0 %v3456_v63  ;;  %2294 = vmatprep.subr.bf16.mxu1 %v3459_v0 }
 0x1d6   :  { %2123 = vmatpush1.bf16.msra.mxu0 %v3454_v1  ;;  %2295 = vmatpush1.bf16.msra.mxu1 %v3457_v2 }
 0x1d7   :  { %2124 = vmatprep.subr.bf16.mxu0 %v3462_v3  ;;  %2296 = vmatprep.subr.bf16.mxu1 %v3465_v4 }
 0x1da   :  { %2125 = vmatpush1.bf16.msra.mxu0 %v3460_v5  ;;  %2297 = vmatpush1.bf16.msra.mxu1 %v3463_v6 }
 0x1db   :  { %2126 = vmatprep.subr.bf16.mxu0 %v3468_v7  ;;  %2298 = vmatprep.subr.bf16.mxu1 %v3471_v8 }
 0x1de   :  { %2127 = vmatpush1.bf16.msra.mxu0 %v3466_v9  ;;  %2299 = vmatpush1.bf16.msra.mxu1 %v3469_v20 }
 0x1df   :  { %3002 = vmatprep.subr.bf16.mxu0 %v3472_v10  ;;  %3024 = vmatprep.subr.bf16.mxu1 %v3473_v11 }
 0x1e1   :  { %2129 = vmatmul.mubr.bf16.vlgmr.msra.gmra.mrb[8].mxu0 %v3707_v18  ;;  %2301 = vmatmul.mubr.bf16.vlgmr.msra.gmra.mrb[8].mxu1 %v3707_v18  ;;  %v3487_v18 = vld [vmem:[#allocation6 + $0x98] sm:$0xff]  }
 0x1e2   :  { %3003 = vmatpush3.bf16.msra.mxu0 %v3474_v12  ;;  %3025 = vmatpush3.bf16.msra.mxu1 %v3475_v13  ;;  %v2960_v13 = vld [vmem:[%s3744_s6] ss:$0 sm:$0xff] }
 0x1e3   :  { %3004 = vmatprep.subr.bf16.mxu0 %v3476_v14  ;;  %3026 = vmatprep.subr.bf16.mxu1 %v3477_v46 }
 0x1e6   :  { %3005 = vmatpush3.bf16.msra.mxu0 %v3478_v15  ;;  %3027 = vmatpush3.bf16.msra.mxu1 %v3479_v37 }
 0x1e7   :  { %3006 = vmatprep.subr.bf16.mxu0 %v3480_v16  ;;  %3028 = vmatprep.subr.bf16.mxu1 %v3481_v41 }
 0x1ea   :  { %3007 = vmatpush3.bf16.msra.mxu0 %v3482_v17  ;;  %3029 = vmatpush3.bf16.msra.mxu1 %v3483_v19 }
 0x1eb   :  { %3008 = vmatprep.subr.bf16.mxu0 %v3484_v21  ;;  %3030 = vmatprep.subr.bf16.mxu1 %v3485_v22 }
 0x1ee   :  { %3009 = vmatpush3.bf16.msra.mxu0 %v3486_v23  ;;  %3031 = vmatpush3.bf16.msra.mxu1 %v3487_v18 }
 0x1ef   :  { %3010 = vmatprep.subr.bf16.mxu0 %v3488_v24  ;;  %3032 = vmatprep.subr.bf16.mxu1 %v3489_v25 }
 0x1f2   :  { %3011 = vmatpush3.bf16.msra.mxu0 %v3490_v26  ;;  %3033 = vmatpush3.bf16.msra.mxu1 %v3491_v27 }
 0x1f3   :  { %3012 = vmatprep.subr.bf16.mxu0 %v3492_v28  ;;  %3034 = vmatprep.subr.bf16.mxu1 %v3493_v29 }
 0x1f6   :  { %3013 = vmatpush3.bf16.msra.mxu0 %v3494_v30  ;;  %3035 = vmatpush3.bf16.msra.mxu1 %v3495_v31 }
 0x1f7   :  { %3014 = vmatprep.subr.bf16.mxu0 %v3496_v32  ;;  %3036 = vmatprep.subr.bf16.mxu1 %v3497_v33 }
 0x1fa   :  { %3015 = vmatpush3.bf16.msra.mxu0 %v3498_v34  ;;  %3037 = vmatpush3.bf16.msra.mxu1 %v3499_v35 }
 0x1fb   :  { %3016 = vmatprep.subr.bf16.mxu0 %v3500_v36  ;;  %3038 = vmatprep.subr.bf16.mxu1 %v3501_v38 }
 0x1fe   :  { %3017 = vmatpush3.bf16.msra.mxu0 %v3502_v45  ;;  %3039 = vmatpush3.bf16.msra.mxu1 %v3503_v47 }
 0x2b4   :  { %v2130_v53 = vpop.f32.mrb[8].mxu0  ;;  %v2302_v54 = vpop.f32.mrb[8].mxu1 }
 0x2b5   :  { %v3046_v55 = vadd.f32 %v2130_v53, %v670_v49  ;;  %v3050_v56 = vadd.f32 %v2302_v54, %v678_v50  ;;  %v2132_v57 = vpop.f32.mrb[9].mxu0  ;;  %v2304_v58 = vpop.f32.mrb[9].mxu1 }
 0x2b6   :  { %v3047_v59 = vadd.f32 %v2132_v57, %v674_v51  ;;  %v3051_v60 = vadd.f32 %v2304_v58, %v682_v52  ;;  %v2134_v61 = vpop.f32.mrb[10].mxu0  ;;  %v2306_v62 = vpop.f32.mrb[10].mxu1 }
 0x2b7   :  { %v3048_v40 = vadd.f32 %v2134_v61, %v670_v49  ;;  %v3052_v63 = vadd.f32 %v2306_v62, %v678_v50  ;;  %v2136_v0 = vpop.f32.mrb[11].mxu0  ;;  %v2308_v43 = vpop.f32.mrb[11].mxu1  ;;  %v2311_v42 = vmax.f32 %v3046_v55, 0.0  ;;  %v2313_v3 = vmax.f32 %v3050_v56, 0.0 }
 0x2b8   :  { %v3049_v1 = vadd.f32 %v2136_v0, %v674_v51  ;;  %v3053_v2 = vadd.f32 %v2308_v43, %v682_v52  ;;  %v2312_v4 = vmax.f32 %v3047_v59, 0.0  ;;  %v2314_v5 = vmax.f32 %v3051_v60, 0.0 }
 0x2b9   :  { %v2315_v39 = vmax.f32 %v3048_v40, 0.0  ;;  %v2317_v44 = vmax.f32 %v3052_v63, 0.0 }
 0x2ba   :  { %v2316_v6 = vmax.f32 %v3049_v1, 0.0  ;;  %v2318_v7 = vmax.f32 %v3053_v2, 0.0 }
 0x2bb   :  { %v2319_v8 = vpack.c.bf16 %v2315_v39, %v2311_v42  ;;  %v2321_v9 = vpack.c.bf16 %v2317_v44, %v2313_v3 }
 0x2bc   :  { %v2320_v20 = vpack.c.bf16 %v2316_v6, %v2312_v4  ;;  %v2322_v10 = vpack.c.bf16 %v2318_v7, %v2314_v5 }
 0x2be   :  { %2618 = vmatprep.mubr.bf16.mxu0 %v2320_v20  ;;  %2659 = vmatprep.mubr.bf16.mxu1 %v2322_v10 }
 0x2bf   :  { %2619 = vmatmul.mubr.bf16.vlgmr.msra.gmra.mrb[12].mxu0 %v2319_v8  ;;  %2660 = vmatmul.mubr.bf16.vlgmr.msra.gmra.mrb[12].mxu1 %v2321_v9 }
 0x392   :  { %v3018_v11 = vpop.f32.mrb[12].mxu0  ;;  %v3040_v12 = vpop.f32.mrb[12].mxu1 }
 0x393   :  { %v3019_v14 = vpop.f32.mrb[13].mxu0  ;;  %v3041_v46 = vpop.f32.mrb[13].mxu1 }
 0x394   :  { %v3020_v15 = vadd.f32 %v3019_v14, %v3018_v11  ;;  %v3042_v37 = vadd.f32 %v3041_v46, %v3040_v12  ;;  %v3021_v16 = vpop.f32.mrb[14].mxu0  ;;  %v3043_v41 = vpop.f32.mrb[14].mxu1 }
 0x395   :  { %v3022_v17 = vpop.f32.mrb[15].mxu0  ;;  %v3044_v19 = vpop.f32.mrb[15].mxu1 }
 0x396   :  { %v2621_v21 = vadd.f32 %v3020_v15, %v2960_v13  ;;  %v3023_v22 = vadd.f32 %v3022_v17, %v3021_v16  ;;  %v3045_v23 = vadd.f32 %v3044_v19, %v3043_v41 }
 0x398   :  { %v2662_v18 = vadd.f32 %v3042_v37, %v2621_v21  ;;  %v2624_v24 = vadd.f32 %v3023_v22, %v2960_v13 }
 0x39a   :  { %v2665_v25 = vadd.f32 %v3045_v23, %v2624_v24 }
 0x39c   :  { %v3000_v26 = vpack.c.bf16 %v2665_v25, %v2662_v18 }
 0x39e   :  { %3001 = vst [vmem:[%s3745_s7] sm:$0xff] %v3000_v26  }
 0x39f   :  { %2682 = vsyncpa [#allocation3], 1 }
 0x3a0   :  { %2683 = vsyncpa [#allocation5], 1 }

</bundles_post_ra>
